<compile_context>
chip_gen: v6e
topology: v6e:2x2x1
jax: 0.10.0
libtpu: 0.0.40
codegen_flags: <defaults>
</compile_context>

<pallas_src>
import functools

import numpy as np
import jax
import jax.numpy as jnp
from jax.experimental import pallas as pl
from jax.experimental.pallas import tpu as pltpu

REF_MIC_IDX = 0                                   # module hparam; unused by this forward
DIAG_LOADING = float(0.001 / np.sqrt(2.0))        # load_rl_img in the PyTorch module


def mvdr_kernel(y_ref, x_ref, d_ref, out_ref, *, diag_loading):
    """MVDR beamforming for one (batch element, frequency tile).

    Factorized form:  Phi_s d = (1/T) X (X^H d)
        u(t,f)   = sum_c conj(x_c(t,f)) d_c(f)                    (T, Ft)
        nume_c   = (1/T) sum_t x_c u  + load*(1+i)*d_c            (1, Ft) per channel
        deno     = (1/T) sum_t |u|^2 + load*||d||^2*(1+i)         (1, Ft), Re >= load*||d||^2
        w_c      = nume_c / deno
        est(t,f) = sum_c conj(w_c) y_c(t,f)

    Ref shapes (after blocking; leading batch dim is 1):
      y_ref  : (1, 2, C, T, Ft)   mixture STFT (real/imag stacked on dim 1)
      x_ref  : (1, 2, C, T, Ft)   target STFT (source of the signal covariance)
      d_ref  : (2, C, 1, Ft)      steering vector (per frequency, shared over batch)
      out_ref: (1, 2, 1, T, Ft)   beamformed estimate
    """
    _, _, C, T, Ft = y_ref.shape
    inv_T = 1.0 / T
    f32 = jnp.float32

    # Steering-vector planes, (1, Ft) each, f32.
    dr = [d_ref[0, c, :, :].astype(f32) for c in range(C)]
    di = [d_ref[1, c, :, :].astype(f32) for c in range(C)]

    # ---- u(t,f) = sum_c conj(x_c) * d_c ----
    xr = x_ref[0, 0, 0, :, :].astype(f32)
    xi = x_ref[0, 1, 0, :, :].astype(f32)
    u_r = xr * dr[0] + xi * di[0]
    u_i = xr * di[0] - xi * dr[0]
    for c in range(1, C):
        xr = x_ref[0, 0, c, :, :].astype(f32)
        xi = x_ref[0, 1, c, :, :].astype(f32)
        u_r = u_r + xr * dr[c] + xi * di[c]
        u_i = u_i + xr * di[c] - xi * dr[c]

    # ---- deno = d^H Phi_s d = (1/T) sum_t |u|^2 + load*||d||^2*(1+i) ----
    dnorm2 = dr[0] * dr[0] + di[0] * di[0]
    for c in range(1, C):
        dnorm2 = dnorm2 + dr[c] * dr[c] + di[c] * di[c]
    deno_r = (jnp.sum(u_r * u_r + u_i * u_i, axis=0, keepdims=True) * inv_T
              + diag_loading * dnorm2)
    deno_i = diag_loading * dnorm2

    # Scalar-per-frequency complex reciprocal: EUP approx reciprocal + one Newton step.
    den = deno_r * deno_r + deno_i * deno_i
    inv_den = pl.reciprocal(den, approx=True)
    inv_den = inv_den * (2.0 - den * inv_den)
    idr = deno_r * inv_den
    idi = -deno_i * inv_den

    # ---- w_c = nume_c / deno ;  est = sum_c conj(w_c) * y_c ----
    acc_r = None
    acc_i = None
    for c in range(C):
        # Re-read x from VMEM (vld slots are idle); keeps vector-register pressure low.
        xr = x_ref[0, 0, c, :, :].astype(f32)
        xi = x_ref[0, 1, c, :, :].astype(f32)
        nr = (jnp.sum(xr * u_r - xi * u_i, axis=0, keepdims=True) * inv_T
              + diag_loading * (dr[c] - di[c]))
        ni = (jnp.sum(xr * u_i + xi * u_r, axis=0, keepdims=True) * inv_T
              + diag_loading * (dr[c] + di[c]))
        wr = nr * idr - ni * idi
        wi = nr * idi + ni * idr
        yr = y_ref[0, 0, c, :, :].astype(f32)
        yi = y_ref[0, 1, c, :, :].astype(f32)
        cr = wr * yr + wi * yi                      # conj(w_c) * y_c
        ci = wr * yi - wi * yr
        acc_r = cr if acc_r is None else acc_r + cr
        acc_i = ci if acc_i is None else acc_i + ci

    out_ref[0, 0, 0, :, :] = acc_r.astype(out_ref.dtype)
    out_ref[0, 1, 0, :, :] = acc_i.astype(out_ref.dtype)


def _physical_vmem_bytes():
    try:
        return int(pltpu.get_tpu_info().vmem_capacity_bytes)
    except Exception:
        return 64 << 20            # v7x per-TC size; most conservative across generations


def mvdr_forward(inputs, ref_mic_idx=REF_MIC_IDX):
    """JAX/Pallas equivalent of MVDR_oracle_using_steering_vector2.forward.

    inputs: dict with 'mixture' (N,2,C,T,F), 'target' (N,2,C,T,F),
            'steering_vector' (2,F,C,1); 'noise' is accepted but unused (as in torch).
    """
    del ref_mic_idx  # present in the module but does not affect this forward
    mixture = inputs['mixture']
    target = inputs['target']
    steering = inputs['steering_vector']

    N, RI, C, T, F = mixture.shape
    assert RI == 2

    # --- pad F up to a lane multiple (standard STFT bin counts: 257 / 513 / ...) ---
    F_pad = ((F + 127) // 128) * 128
    pad = F_pad - F
    if pad:
        padw = ((0, 0),) * 4 + ((0, pad),)
        mixture_p = jnp.pad(mixture, padw)
        target_p = jnp.pad(target, padw)
    else:
        mixture_p, target_p = mixture, target

    # Steering vector (2, F, C, 1) -> (2, C, 1, F_pad): F on the lane axis.  Padded bins get a
    # unit real steering entry so deno stays strictly positive there (those lanes are sliced off).
    d = jnp.transpose(steering[..., 0], (0, 2, 1))[:, :, None, :]
    if pad:
        d = jnp.pad(d, ((0, 0), (0, 0), (0, 0), (0, pad)))
        d = d.at[0, :, :, F:].set(jnp.asarray(1.0, d.dtype))

    itemsize = jnp.dtype(mixture.dtype).itemsize
    d_itemsize = jnp.dtype(d.dtype).itemsize
    phys_vmem = _physical_vmem_bytes()
    budget = phys_vmem // 2        # v7x: ~32 MiB of buffers per step, v5e/v6e: ~64 MiB

    def footprint(f_tile, nbuf_in):
        in_block = 2 * C * T * f_tile * itemsize          # one (1,2,C,T,f) block
        out_block = 2 * T * f_tile * itemsize             # one (1,2,1,T,f) block
        d_block = 2 * C * f_tile * d_itemsize
        scratch = (8 * T + 16) * f_tile * 4                # f32 temporaries (u, acc, casts)
        return 2 * nbuf_in * in_block + 2 * out_block + 2 * d_block + scratch

    # Largest multiple of 128 that divides F_pad and fits the VMEM budget (double-buffered).
    f_tile = 128
    for k in range(F_pad // 128, 0, -1):
        f = k * 128
        if F_pad % f == 0 and footprint(f, 2) <= budget:
            f_tile = f
            break
    # TODO(synk): for very large T even f_tile=128 can exceed the budget; tile T with a trailing
    # "arbitrary" reduction grid axis (accumulate nume / sum|u|^2 in VMEM scratch) instead of
    # shrinking the lane width.

    steps = N * (F_pad // f_tile)
    nbuf_in = 3 if (steps >= 3 and footprint(f_tile, 3) <= budget) else 2
    fp = footprint(f_tile, nbuf_in)
    vmem_limit = int(max(32 << 20, min(phys_vmem - (4 << 20), fp + (8 << 20))))

    in_block_shape = (1, 2, C, T, f_tile)
    in_map = lambda n, f: (n, 0, 0, 0, f)
    if nbuf_in > 2:
        def make_in_spec():
            return pl.BlockSpec(in_block_shape, in_map, pipeline_mode=pl.Buffered(nbuf_in))
    else:
        def make_in_spec():
            return pl.BlockSpec(in_block_shape, in_map)

    kernel = functools.partial(mvdr_kernel, diag_loading=DIAG_LOADING)
    est = pl.pallas_call(
        kernel,
        out_shape=jax.ShapeDtypeStruct((N, 2, 1, T, F_pad), mixture.dtype),
        grid=(N, F_pad // f_tile),
        in_specs=[
            make_in_spec(),                                            # mixture y
            make_in_spec(),                                            # target x
            pl.BlockSpec((2, C, 1, f_tile), lambda n, f: (0, 0, 0, f)),  # steering d
        ],
        out_specs=pl.BlockSpec((1, 2, 1, T, f_tile), lambda n, f: (n, 0, 0, 0, f)),
        compiler_params=pltpu.CompilerParams(
            dimension_semantics=("parallel", "parallel"),
            vmem_limit_bytes=vmem_limit,
        ),
    )(mixture_p, target_p, d)

    if pad:
        est = est[..., :F]
    return {'est_target': est}


def reference_forward_np(y, x, d):
    """Pure numpy (float64/complex128) reference of the PyTorch forward."""
    y = np.asarray(y, np.float64)
    x = np.asarray(x, np.float64)
    d = np.asarray(d, np.float64)
    N, _, C, T, F = y.shape
    yc = y[:, 0] + 1j * y[:, 1]                       # (N, C, T, F)
    xc = x[:, 0] + 1j * x[:, 1]
    dc = (d[0] + 1j * d[1])[None]                     # (1, F, C, 1)

    xv = np.transpose(xc, (0, 3, 2, 1))               # (N, F, T, C)
    phi_s = np.einsum('nftc,nftd->nfcd', xv, np.conj(xv)) / T
    eye = np.eye(C)
    phi_s = phi_s + DIAG_LOADING * eye + 1j * DIAG_LOADING * eye

    w_nume = phi_s @ dc                               # (N, F, C, 1)
    dH = np.conj(np.swapaxes(dc, -1, -2))             # (1, F, 1, C)
    w_deno = dH @ phi_s @ dc                          # (N, F, 1, 1)
    w = w_nume / w_deno                               # (N, F, C, 1)

    yv = np.transpose(yc, (0, 3, 2, 1))               # (N, F, T, C)
    xbf = np.einsum('nfc,nftc->nft', np.conj(w[..., 0]), yv)
    xbf = np.transpose(xbf, (0, 2, 1))                # (N, T, F)
    out = np.stack([xbf.real, xbf.imag], axis=1)[:, :, None]  # (N, 2, 1, T, F)
    return out.astype(np.float32)


if __name__ == "__main__":
    key = jax.random.PRNGKey(0)

    def run_case(N, C, T, F, case_key):
        k1, k2, k3, k4 = jax.random.split(case_key, 4)
        mixture = jax.random.normal(k1, (N, 2, C, T, F), jnp.float32)
        target = jax.random.normal(k2, (N, 2, C, T, F), jnp.float32)
        noise = jax.random.normal(k3, (N, 2, C, T, F), jnp.float32)   # dead input, as in torch
        steering = jax.random.normal(k4, (2, F, C, 1), jnp.float32)
        out = mvdr_forward({'mixture': mixture, 'noise': noise,
                            'target': target, 'steering_vector': steering})
        est = jax.block_until_ready(out['est_target'])
        ref = reference_forward_np(np.asarray(mixture), np.asarray(target), np.asarray(steering))
        np.testing.assert_allclose(np.asarray(est), ref, rtol=2e-2, atol=2e-3)

    k1, k2 = jax.random.split(key)
    run_case(2, 4, 8, 513, k1)    # realistic STFT bin count (padding path), grid (2, 1)
    run_case(4, 4, 16, 768, k2)   # >= 3 grid steps -> exercises the 3-deep input pipeline
    print("KERNEL_OK")
</pallas_src>

<mosaic_0001>
module attributes {stable_mosaic.version = 11 : i64} {
  func.func @mvdr_kernel(%arg0: i32, %arg1: i32, %arg2: memref<1x2x4x8x640xf32, #tpu.memory_space<vmem>>, %arg3: memref<1x2x4x8x640xf32, #tpu.memory_space<vmem>>, %arg4: memref<2x4x1x640xf32, #tpu.memory_space<vmem>>, %arg5: memref<1x2x1x8x640xf32, #tpu.memory_space<vmem>>) attributes {dimension_semantics = [#tpu.dimension_semantics<parallel>, #tpu.dimension_semantics<parallel>], iteration_bounds = array<i64: 2, 1>, scalar_prefetch = 0 : i64, scratch_operands = 0 : i64, tpu.core_type = #tpu.core_type<tc>, window_params = [{transform_indices = @transform_0, window_bounds = array<i64: 1, 2, 4, 8, 640>}, {transform_indices = @transform_1, window_bounds = array<i64: 1, 2, 4, 8, 640>}, {transform_indices = @transform_2, window_bounds = array<i64: 2, 4, 1, 640>}, {transform_indices = @transform_3, window_bounds = array<i64: 1, 2, 1, 8, 640>}]} {
    %c0 = arith.constant 0 : index
    %c0_0 = arith.constant 0 : index
    %c0_1 = arith.constant 0 : index
    %c0_2 = arith.constant 0 : index
    %0 = vector.load %arg4[%c0, %c0_0, %c0_1, %c0_2] : memref<2x4x1x640xf32, #tpu.memory_space<vmem>>, vector<1x1x1x640xf32>
    %1 = vector.shape_cast %0 : vector<1x1x1x640xf32> to vector<1x640xf32>
    %c0_3 = arith.constant 0 : index
    %c1 = arith.constant 1 : index
    %c0_4 = arith.constant 0 : index
    %c0_5 = arith.constant 0 : index
    %2 = vector.load %arg4[%c0_3, %c1, %c0_4, %c0_5] : memref<2x4x1x640xf32, #tpu.memory_space<vmem>>, vector<1x1x1x640xf32>
    %3 = vector.shape_cast %2 : vector<1x1x1x640xf32> to vector<1x640xf32>
    %c0_6 = arith.constant 0 : index
    %c2 = arith.constant 2 : index
    %c0_7 = arith.constant 0 : index
    %c0_8 = arith.constant 0 : index
    %4 = vector.load %arg4[%c0_6, %c2, %c0_7, %c0_8] : memref<2x4x1x640xf32, #tpu.memory_space<vmem>>, vector<1x1x1x640xf32>
    %5 = vector.shape_cast %4 : vector<1x1x1x640xf32> to vector<1x640xf32>
    %c0_9 = arith.constant 0 : index
    %c3 = arith.constant 3 : index
    %c0_10 = arith.constant 0 : index
    %c0_11 = arith.constant 0 : index
    %6 = vector.load %arg4[%c0_9, %c3, %c0_10, %c0_11] : memref<2x4x1x640xf32, #tpu.memory_space<vmem>>, vector<1x1x1x640xf32>
    %7 = vector.shape_cast %6 : vector<1x1x1x640xf32> to vector<1x640xf32>
    %c1_12 = arith.constant 1 : index
    %c0_13 = arith.constant 0 : index
    %c0_14 = arith.constant 0 : index
    %c0_15 = arith.constant 0 : index
    %8 = vector.load %arg4[%c1_12, %c0_13, %c0_14, %c0_15] : memref<2x4x1x640xf32, #tpu.memory_space<vmem>>, vector<1x1x1x640xf32>
    %9 = vector.shape_cast %8 : vector<1x1x1x640xf32> to vector<1x640xf32>
    %c1_16 = arith.constant 1 : index
    %c1_17 = arith.constant 1 : index
    %c0_18 = arith.constant 0 : index
    %c0_19 = arith.constant 0 : index
    %10 = vector.load %arg4[%c1_16, %c1_17, %c0_18, %c0_19] : memref<2x4x1x640xf32, #tpu.memory_space<vmem>>, vector<1x1x1x640xf32>
    %11 = vector.shape_cast %10 : vector<1x1x1x640xf32> to vector<1x640xf32>
    %c1_20 = arith.constant 1 : index
    %c2_21 = arith.constant 2 : index
    %c0_22 = arith.constant 0 : index
    %c0_23 = arith.constant 0 : index
    %12 = vector.load %arg4[%c1_20, %c2_21, %c0_22, %c0_23] : memref<2x4x1x640xf32, #tpu.memory_space<vmem>>, vector<1x1x1x640xf32>
    %13 = vector.shape_cast %12 : vector<1x1x1x640xf32> to vector<1x640xf32>
    %c1_24 = arith.constant 1 : index
    %c3_25 = arith.constant 3 : index
    %c0_26 = arith.constant 0 : index
    %c0_27 = arith.constant 0 : index
    %14 = vector.load %arg4[%c1_24, %c3_25, %c0_26, %c0_27] : memref<2x4x1x640xf32, #tpu.memory_space<vmem>>, vector<1x1x1x640xf32>
    %15 = vector.shape_cast %14 : vector<1x1x1x640xf32> to vector<1x640xf32>
    %c0_28 = arith.constant 0 : index
    %c0_29 = arith.constant 0 : index
    %c0_30 = arith.constant 0 : index
    %c0_31 = arith.constant 0 : index
    %c0_32 = arith.constant 0 : index
    %16 = vector.load %arg3[%c0_28, %c0_29, %c0_30, %c0_31, %c0_32] : memref<1x2x4x8x640xf32, #tpu.memory_space<vmem>>, vector<1x1x1x8x640xf32>
    %17 = vector.shape_cast %16 : vector<1x1x1x8x640xf32> to vector<8x640xf32>
    %c0_33 = arith.constant 0 : index
    %c1_34 = arith.constant 1 : index
    %c0_35 = arith.constant 0 : index
    %c0_36 = arith.constant 0 : index
    %c0_37 = arith.constant 0 : index
    %18 = vector.load %arg3[%c0_33, %c1_34, %c0_35, %c0_36, %c0_37] : memref<1x2x4x8x640xf32, #tpu.memory_space<vmem>>, vector<1x1x1x8x640xf32>
    %19 = vector.shape_cast %18 : vector<1x1x1x8x640xf32> to vector<8x640xf32>
    %20 = vector.broadcast %1 : vector<1x640xf32> to vector<8x640xf32>
    %21 = arith.mulf %17, %20 : vector<8x640xf32>
    %22 = vector.broadcast %9 : vector<1x640xf32> to vector<8x640xf32>
    %23 = arith.mulf %19, %22 : vector<8x640xf32>
    %24 = arith.addf %21, %23 : vector<8x640xf32>
    %25 = vector.broadcast %9 : vector<1x640xf32> to vector<8x640xf32>
    %26 = arith.mulf %17, %25 : vector<8x640xf32>
    %27 = vector.broadcast %1 : vector<1x640xf32> to vector<8x640xf32>
    %28 = arith.mulf %19, %27 : vector<8x640xf32>
    %29 = arith.subf %26, %28 : vector<8x640xf32>
    %c0_38 = arith.constant 0 : index
    %c0_39 = arith.constant 0 : index
    %c1_40 = arith.constant 1 : index
    %c0_41 = arith.constant 0 : index
    %c0_42 = arith.constant 0 : index
    %30 = vector.load %arg3[%c0_38, %c0_39, %c1_40, %c0_41, %c0_42] : memref<1x2x4x8x640xf32, #tpu.memory_space<vmem>>, vector<1x1x1x8x640xf32>
    %31 = vector.shape_cast %30 : vector<1x1x1x8x640xf32> to vector<8x640xf32>
    %c0_43 = arith.constant 0 : index
    %c1_44 = arith.constant 1 : index
    %c1_45 = arith.constant 1 : index
    %c0_46 = arith.constant 0 : index
    %c0_47 = arith.constant 0 : index
    %32 = vector.load %arg3[%c0_43, %c1_44, %c1_45, %c0_46, %c0_47] : memref<1x2x4x8x640xf32, #tpu.memory_space<vmem>>, vector<1x1x1x8x640xf32>
    %33 = vector.shape_cast %32 : vector<1x1x1x8x640xf32> to vector<8x640xf32>
    %34 = vector.broadcast %3 : vector<1x640xf32> to vector<8x640xf32>
    %35 = arith.mulf %31, %34 : vector<8x640xf32>
    %36 = arith.addf %24, %35 : vector<8x640xf32>
    %37 = vector.broadcast %11 : vector<1x640xf32> to vector<8x640xf32>
    %38 = arith.mulf %33, %37 : vector<8x640xf32>
    %39 = arith.addf %36, %38 : vector<8x640xf32>
    %40 = vector.broadcast %11 : vector<1x640xf32> to vector<8x640xf32>
    %41 = arith.mulf %31, %40 : vector<8x640xf32>
    %42 = arith.addf %29, %41 : vector<8x640xf32>
    %43 = vector.broadcast %3 : vector<1x640xf32> to vector<8x640xf32>
    %44 = arith.mulf %33, %43 : vector<8x640xf32>
    %45 = arith.subf %42, %44 : vector<8x640xf32>
    %c0_48 = arith.constant 0 : index
    %c0_49 = arith.constant 0 : index
    %c2_50 = arith.constant 2 : index
    %c0_51 = arith.constant 0 : index
    %c0_52 = arith.constant 0 : index
    %46 = vector.load %arg3[%c0_48, %c0_49, %c2_50, %c0_51, %c0_52] : memref<1x2x4x8x640xf32, #tpu.memory_space<vmem>>, vector<1x1x1x8x640xf32>
    %47 = vector.shape_cast %46 : vector<1x1x1x8x640xf32> to vector<8x640xf32>
    %c0_53 = arith.constant 0 : index
    %c1_54 = arith.constant 1 : index
    %c2_55 = arith.constant 2 : index
    %c0_56 = arith.constant 0 : index
    %c0_57 = arith.constant 0 : index
    %48 = vector.load %arg3[%c0_53, %c1_54, %c2_55, %c0_56, %c0_57] : memref<1x2x4x8x640xf32, #tpu.memory_space<vmem>>, vector<1x1x1x8x640xf32>
    %49 = vector.shape_cast %48 : vector<1x1x1x8x640xf32> to vector<8x640xf32>
    %50 = vector.broadcast %5 : vector<1x640xf32> to vector<8x640xf32>
    %51 = arith.mulf %47, %50 : vector<8x640xf32>
    %52 = arith.addf %39, %51 : vector<8x640xf32>
    %53 = vector.broadcast %13 : vector<1x640xf32> to vector<8x640xf32>
    %54 = arith.mulf %49, %53 : vector<8x640xf32>
    %55 = arith.addf %52, %54 : vector<8x640xf32>
    %56 = vector.broadcast %13 : vector<1x640xf32> to vector<8x640xf32>
    %57 = arith.mulf %47, %56 : vector<8x640xf32>
    %58 = arith.addf %45, %57 : vector<8x640xf32>
    %59 = vector.broadcast %5 : vector<1x640xf32> to vector<8x640xf32>
    %60 = arith.mulf %49, %59 : vector<8x640xf32>
    %61 = arith.subf %58, %60 : vector<8x640xf32>
    %c0_58 = arith.constant 0 : index
    %c0_59 = arith.constant 0 : index
    %c3_60 = arith.constant 3 : index
    %c0_61 = arith.constant 0 : index
    %c0_62 = arith.constant 0 : index
    %62 = vector.load %arg3[%c0_58, %c0_59, %c3_60, %c0_61, %c0_62] : memref<1x2x4x8x640xf32, #tpu.memory_space<vmem>>, vector<1x1x1x8x640xf32>
    %63 = vector.shape_cast %62 : vector<1x1x1x8x640xf32> to vector<8x640xf32>
    %c0_63 = arith.constant 0 : index
    %c1_64 = arith.constant 1 : index
    %c3_65 = arith.constant 3 : index
    %c0_66 = arith.constant 0 : index
    %c0_67 = arith.constant 0 : index
    %64 = vector.load %arg3[%c0_63, %c1_64, %c3_65, %c0_66, %c0_67] : memref<1x2x4x8x640xf32, #tpu.memory_space<vmem>>, vector<1x1x1x8x640xf32>
    %65 = vector.shape_cast %64 : vector<1x1x1x8x640xf32> to vector<8x640xf32>
    %66 = vector.broadcast %7 : vector<1x640xf32> to vector<8x640xf32>
    %67 = arith.mulf %63, %66 : vector<8x640xf32>
    %68 = arith.addf %55, %67 : vector<8x640xf32>
    %69 = vector.broadcast %15 : vector<1x640xf32> to vector<8x640xf32>
    %70 = arith.mulf %65, %69 : vector<8x640xf32>
    %71 = arith.addf %68, %70 : vector<8x640xf32>
    %72 = vector.broadcast %15 : vector<1x640xf32> to vector<8x640xf32>
    %73 = arith.mulf %63, %72 : vector<8x640xf32>
    %74 = arith.addf %61, %73 : vector<8x640xf32>
    %75 = vector.broadcast %7 : vector<1x640xf32> to vector<8x640xf32>
    %76 = arith.mulf %65, %75 : vector<8x640xf32>
    %77 = arith.subf %74, %76 : vector<8x640xf32>
    %78 = arith.mulf %1, %1 : vector<1x640xf32>
    %79 = arith.mulf %9, %9 : vector<1x640xf32>
    %80 = arith.addf %78, %79 : vector<1x640xf32>
    %81 = arith.mulf %3, %3 : vector<1x640xf32>
    %82 = arith.addf %80, %81 : vector<1x640xf32>
    %83 = arith.mulf %11, %11 : vector<1x640xf32>
    %84 = arith.addf %82, %83 : vector<1x640xf32>
    %85 = arith.mulf %5, %5 : vector<1x640xf32>
    %86 = arith.addf %84, %85 : vector<1x640xf32>
    %87 = arith.mulf %13, %13 : vector<1x640xf32>
    %88 = arith.addf %86, %87 : vector<1x640xf32>
    %89 = arith.mulf %7, %7 : vector<1x640xf32>
    %90 = arith.addf %88, %89 : vector<1x640xf32>
    %91 = arith.mulf %15, %15 : vector<1x640xf32>
    %92 = arith.addf %90, %91 : vector<1x640xf32>
    %93 = arith.mulf %71, %71 : vector<8x640xf32>
    %94 = arith.mulf %77, %77 : vector<8x640xf32>
    %95 = arith.addf %93, %94 : vector<8x640xf32>
    %cst = arith.constant dense<0.000000e+00> : vector<640xf32>
    %96 = vector.multi_reduction <add>, %95, %cst [0] : vector<8x640xf32> to vector<640xf32>
    %97 = vector.shape_cast %96 : vector<640xf32> to vector<1x640xf32>
    %cst_68 = arith.constant 1.250000e-01 : f32
    %98 = vector.broadcast %cst_68 : f32 to vector<1x640xf32>
    %99 = arith.mulf %97, %98 : vector<1x640xf32>
    %cst_69 = arith.constant 7.07106781E-4 : f32
    %100 = vector.broadcast %cst_69 : f32 to vector<1x640xf32>
    %101 = arith.mulf %100, %92 : vector<1x640xf32>
    %102 = arith.addf %99, %101 : vector<1x640xf32>
    %cst_70 = arith.constant 7.07106781E-4 : f32
    %103 = vector.broadcast %cst_70 : f32 to vector<1x640xf32>
    %104 = arith.mulf %103, %92 : vector<1x640xf32>
    %105 = arith.mulf %102, %102 : vector<1x640xf32>
    %106 = arith.mulf %104, %104 : vector<1x640xf32>
    %107 = arith.addf %105, %106 : vector<1x640xf32>
    %108 = tpu.reciprocal %107 {approx = true} : vector<1x640xf32> -> vector<1x640xf32>
    %109 = arith.mulf %107, %108 : vector<1x640xf32>
    %cst_71 = arith.constant 2.000000e+00 : f32
    %110 = vector.broadcast %cst_71 : f32 to vector<1x640xf32>
    %111 = arith.subf %110, %109 : vector<1x640xf32>
    %112 = arith.mulf %108, %111 : vector<1x640xf32>
    %113 = arith.mulf %102, %112 : vector<1x640xf32>
    %cst_72 = arith.constant 0.000000e+00 : f32
    %114 = vector.broadcast %cst_72 : f32 to vector<1x640xf32>
    %115 = arith.subf %114, %104 : vector<1x640xf32>
    %116 = arith.mulf %115, %112 : vector<1x640xf32>
    %c0_73 = arith.constant 0 : index
    %c0_74 = arith.constant 0 : index
    %c0_75 = arith.constant 0 : index
    %c0_76 = arith.constant 0 : index
    %c0_77 = arith.constant 0 : index
    %117 = vector.load %arg3[%c0_73, %c0_74, %c0_75, %c0_76, %c0_77] : memref<1x2x4x8x640xf32, #tpu.memory_space<vmem>>, vector<1x1x1x8x640xf32>
    %118 = vector.shape_cast %117 : vector<1x1x1x8x640xf32> to vector<8x640xf32>
    %c0_78 = arith.constant 0 : index
    %c1_79 = arith.constant 1 : index
    %c0_80 = arith.constant 0 : index
    %c0_81 = arith.constant 0 : index
    %c0_82 = arith.constant 0 : index
    %119 = vector.load %arg3[%c0_78, %c1_79, %c0_80, %c0_81, %c0_82] : memref<1x2x4x8x640xf32, #tpu.memory_space<vmem>>, vector<1x1x1x8x640xf32>
    %120 = vector.shape_cast %119 : vector<1x1x1x8x640xf32> to vector<8x640xf32>
    %121 = arith.mulf %118, %71 : vector<8x640xf32>
    %122 = arith.mulf %120, %77 : vector<8x640xf32>
    %123 = arith.subf %121, %122 : vector<8x640xf32>
    %cst_83 = arith.constant dense<0.000000e+00> : vector<640xf32>
    %124 = vector.multi_reduction <add>, %123, %cst_83 [0] : vector<8x640xf32> to vector<640xf32>
    %125 = vector.shape_cast %124 : vector<640xf32> to vector<1x640xf32>
    %cst_84 = arith.constant 1.250000e-01 : f32
    %126 = vector.broadcast %cst_84 : f32 to vector<1x640xf32>
    %127 = arith.mulf %125, %126 : vector<1x640xf32>
    %128 = arith.subf %1, %9 : vector<1x640xf32>
    %cst_85 = arith.constant 7.07106781E-4 : f32
    %129 = vector.broadcast %cst_85 : f32 to vector<1x640xf32>
    %130 = arith.mulf %129, %128 : vector<1x640xf32>
    %131 = arith.addf %127, %130 : vector<1x640xf32>
    %132 = arith.mulf %118, %77 : vector<8x640xf32>
    %133 = arith.mulf %120, %71 : vector<8x640xf32>
    %134 = arith.addf %132, %133 : vector<8x640xf32>
    %cst_86 = arith.constant dense<0.000000e+00> : vector<640xf32>
    %135 = vector.multi_reduction <add>, %134, %cst_86 [0] : vector<8x640xf32> to vector<640xf32>
    %136 = vector.shape_cast %135 : vector<640xf32> to vector<1x640xf32>
    %cst_87 = arith.constant 1.250000e-01 : f32
    %137 = vector.broadcast %cst_87 : f32 to vector<1x640xf32>
    %138 = arith.mulf %136, %137 : vector<1x640xf32>
    %139 = arith.addf %1, %9 : vector<1x640xf32>
    %cst_88 = arith.constant 7.07106781E-4 : f32
    %140 = vector.broadcast %cst_88 : f32 to vector<1x640xf32>
    %141 = arith.mulf %140, %139 : vector<1x640xf32>
    %142 = arith.addf %138, %141 : vector<1x640xf32>
    %143 = arith.mulf %131, %113 : vector<1x640xf32>
    %144 = arith.mulf %142, %116 : vector<1x640xf32>
    %145 = arith.subf %143, %144 : vector<1x640xf32>
    %146 = arith.mulf %131, %116 : vector<1x640xf32>
    %147 = arith.mulf %142, %113 : vector<1x640xf32>
    %148 = arith.addf %146, %147 : vector<1x640xf32>
    %c0_89 = arith.constant 0 : index
    %c0_90 = arith.constant 0 : index
    %c0_91 = arith.constant 0 : index
    %c0_92 = arith.constant 0 : index
    %c0_93 = arith.constant 0 : index
    %149 = vector.load %arg2[%c0_89, %c0_90, %c0_91, %c0_92, %c0_93] : memref<1x2x4x8x640xf32, #tpu.memory_space<vmem>>, vector<1x1x1x8x640xf32>
    %150 = vector.shape_cast %149 : vector<1x1x1x8x640xf32> to vector<8x640xf32>
    %c0_94 = arith.constant 0 : index
    %c1_95 = arith.constant 1 : index
    %c0_96 = arith.constant 0 : index
    %c0_97 = arith.constant 0 : index
    %c0_98 = arith.constant 0 : index
    %151 = vector.load %arg2[%c0_94, %c1_95, %c0_96, %c0_97, %c0_98] : memref<1x2x4x8x640xf32, #tpu.memory_space<vmem>>, vector<1x1x1x8x640xf32>
    %152 = vector.shape_cast %151 : vector<1x1x1x8x640xf32> to vector<8x640xf32>
    %153 = vector.broadcast %145 : vector<1x640xf32> to vector<8x640xf32>
    %154 = arith.mulf %153, %150 : vector<8x640xf32>
    %155 = vector.broadcast %148 : vector<1x640xf32> to vector<8x640xf32>
    %156 = arith.mulf %155, %152 : vector<8x640xf32>
    %157 = arith.addf %154, %156 : vector<8x640xf32>
    %158 = vector.broadcast %145 : vector<1x640xf32> to vector<8x640xf32>
    %159 = arith.mulf %158, %152 : vector<8x640xf32>
    %160 = vector.broadcast %148 : vector<1x640xf32> to vector<8x640xf32>
    %161 = arith.mulf %160, %150 : vector<8x640xf32>
    %162 = arith.subf %159, %161 : vector<8x640xf32>
    %c0_99 = arith.constant 0 : index
    %c0_100 = arith.constant 0 : index
    %c1_101 = arith.constant 1 : index
    %c0_102 = arith.constant 0 : index
    %c0_103 = arith.constant 0 : index
    %163 = vector.load %arg3[%c0_99, %c0_100, %c1_101, %c0_102, %c0_103] : memref<1x2x4x8x640xf32, #tpu.memory_space<vmem>>, vector<1x1x1x8x640xf32>
    %164 = vector.shape_cast %163 : vector<1x1x1x8x640xf32> to vector<8x640xf32>
    %c0_104 = arith.constant 0 : index
    %c1_105 = arith.constant 1 : index
    %c1_106 = arith.constant 1 : index
    %c0_107 = arith.constant 0 : index
    %c0_108 = arith.constant 0 : index
    %165 = vector.load %arg3[%c0_104, %c1_105, %c1_106, %c0_107, %c0_108] : memref<1x2x4x8x640xf32, #tpu.memory_space<vmem>>, vector<1x1x1x8x640xf32>
    %166 = vector.shape_cast %165 : vector<1x1x1x8x640xf32> to vector<8x640xf32>
    %167 = arith.mulf %164, %71 : vector<8x640xf32>
    %168 = arith.mulf %166, %77 : vector<8x640xf32>
    %169 = arith.subf %167, %168 : vector<8x640xf32>
    %cst_109 = arith.constant dense<0.000000e+00> : vector<640xf32>
    %170 = vector.multi_reduction <add>, %169, %cst_109 [0] : vector<8x640xf32> to vector<640xf32>
    %171 = vector.shape_cast %170 : vector<640xf32> to vector<1x640xf32>
    %cst_110 = arith.constant 1.250000e-01 : f32
    %172 = vector.broadcast %cst_110 : f32 to vector<1x640xf32>
    %173 = arith.mulf %171, %172 : vector<1x640xf32>
    %174 = arith.subf %3, %11 : vector<1x640xf32>
    %cst_111 = arith.constant 7.07106781E-4 : f32
    %175 = vector.broadcast %cst_111 : f32 to vector<1x640xf32>
    %176 = arith.mulf %175, %174 : vector<1x640xf32>
    %177 = arith.addf %173, %176 : vector<1x640xf32>
    %178 = arith.mulf %164, %77 : vector<8x640xf32>
    %179 = arith.mulf %166, %71 : vector<8x640xf32>
    %180 = arith.addf %178, %179 : vector<8x640xf32>
    %cst_112 = arith.constant dense<0.000000e+00> : vector<640xf32>
    %181 = vector.multi_reduction <add>, %180, %cst_112 [0] : vector<8x640xf32> to vector<640xf32>
    %182 = vector.shape_cast %181 : vector<640xf32> to vector<1x640xf32>
    %cst_113 = arith.constant 1.250000e-01 : f32
    %183 = vector.broadcast %cst_113 : f32 to vector<1x640xf32>
    %184 = arith.mulf %182, %183 : vector<1x640xf32>
    %185 = arith.addf %3, %11 : vector<1x640xf32>
    %cst_114 = arith.constant 7.07106781E-4 : f32
    %186 = vector.broadcast %cst_114 : f32 to vector<1x640xf32>
    %187 = arith.mulf %186, %185 : vector<1x640xf32>
    %188 = arith.addf %184, %187 : vector<1x640xf32>
    %189 = arith.mulf %177, %113 : vector<1x640xf32>
    %190 = arith.mulf %188, %116 : vector<1x640xf32>
    %191 = arith.subf %189, %190 : vector<1x640xf32>
    %192 = arith.mulf %177, %116 : vector<1x640xf32>
    %193 = arith.mulf %188, %113 : vector<1x640xf32>
    %194 = arith.addf %192, %193 : vector<1x640xf32>
    %c0_115 = arith.constant 0 : index
    %c0_116 = arith.constant 0 : index
    %c1_117 = arith.constant 1 : index
    %c0_118 = arith.constant 0 : index
    %c0_119 = arith.constant 0 : index
    %195 = vector.load %arg2[%c0_115, %c0_116, %c1_117, %c0_118, %c0_119] : memref<1x2x4x8x640xf32, #tpu.memory_space<vmem>>, vector<1x1x1x8x640xf32>
    %196 = vector.shape_cast %195 : vector<1x1x1x8x640xf32> to vector<8x640xf32>
    %c0_120 = arith.constant 0 : index
    %c1_121 = arith.constant 1 : index
    %c1_122 = arith.constant 1 : index
    %c0_123 = arith.constant 0 : index
    %c0_124 = arith.constant 0 : index
    %197 = vector.load %arg2[%c0_120, %c1_121, %c1_122, %c0_123, %c0_124] : memref<1x2x4x8x640xf32, #tpu.memory_space<vmem>>, vector<1x1x1x8x640xf32>
    %198 = vector.shape_cast %197 : vector<1x1x1x8x640xf32> to vector<8x640xf32>
    %199 = vector.broadcast %191 : vector<1x640xf32> to vector<8x640xf32>
    %200 = arith.mulf %199, %196 : vector<8x640xf32>
    %201 = vector.broadcast %194 : vector<1x640xf32> to vector<8x640xf32>
    %202 = arith.mulf %201, %198 : vector<8x640xf32>
    %203 = arith.addf %200, %202 : vector<8x640xf32>
    %204 = vector.broadcast %191 : vector<1x640xf32> to vector<8x640xf32>
    %205 = arith.mulf %204, %198 : vector<8x640xf32>
    %206 = vector.broadcast %194 : vector<1x640xf32> to vector<8x640xf32>
    %207 = arith.mulf %206, %196 : vector<8x640xf32>
    %208 = arith.subf %205, %207 : vector<8x640xf32>
    %209 = arith.addf %157, %203 : vector<8x640xf32>
    %210 = arith.addf %162, %208 : vector<8x640xf32>
    %c0_125 = arith.constant 0 : index
    %c0_126 = arith.constant 0 : index
    %c2_127 = arith.constant 2 : index
    %c0_128 = arith.constant 0 : index
    %c0_129 = arith.constant 0 : index
    %211 = vector.load %arg3[%c0_125, %c0_126, %c2_127, %c0_128, %c0_129] : memref<1x2x4x8x640xf32, #tpu.memory_space<vmem>>, vector<1x1x1x8x640xf32>
    %212 = vector.shape_cast %211 : vector<1x1x1x8x640xf32> to vector<8x640xf32>
    %c0_130 = arith.constant 0 : index
    %c1_131 = arith.constant 1 : index
    %c2_132 = arith.constant 2 : index
    %c0_133 = arith.constant 0 : index
    %c0_134 = arith.constant 0 : index
    %213 = vector.load %arg3[%c0_130, %c1_131, %c2_132, %c0_133, %c0_134] : memref<1x2x4x8x640xf32, #tpu.memory_space<vmem>>, vector<1x1x1x8x640xf32>
    %214 = vector.shape_cast %213 : vector<1x1x1x8x640xf32> to vector<8x640xf32>
    %215 = arith.mulf %212, %71 : vector<8x640xf32>
    %216 = arith.mulf %214, %77 : vector<8x640xf32>
    %217 = arith.subf %215, %216 : vector<8x640xf32>
    %cst_135 = arith.constant dense<0.000000e+00> : vector<640xf32>
    %218 = vector.multi_reduction <add>, %217, %cst_135 [0] : vector<8x640xf32> to vector<640xf32>
    %219 = vector.shape_cast %218 : vector<640xf32> to vector<1x640xf32>
    %cst_136 = arith.constant 1.250000e-01 : f32
    %220 = vector.broadcast %cst_136 : f32 to vector<1x640xf32>
    %221 = arith.mulf %219, %220 : vector<1x640xf32>
    %222 = arith.subf %5, %13 : vector<1x640xf32>
    %cst_137 = arith.constant 7.07106781E-4 : f32
    %223 = vector.broadcast %cst_137 : f32 to vector<1x640xf32>
    %224 = arith.mulf %223, %222 : vector<1x640xf32>
    %225 = arith.addf %221, %224 : vector<1x640xf32>
    %226 = arith.mulf %212, %77 : vector<8x640xf32>
    %227 = arith.mulf %214, %71 : vector<8x640xf32>
    %228 = arith.addf %226, %227 : vector<8x640xf32>
    %cst_138 = arith.constant dense<0.000000e+00> : vector<640xf32>
    %229 = vector.multi_reduction <add>, %228, %cst_138 [0] : vector<8x640xf32> to vector<640xf32>
    %230 = vector.shape_cast %229 : vector<640xf32> to vector<1x640xf32>
    %cst_139 = arith.constant 1.250000e-01 : f32
    %231 = vector.broadcast %cst_139 : f32 to vector<1x640xf32>
    %232 = arith.mulf %230, %231 : vector<1x640xf32>
    %233 = arith.addf %5, %13 : vector<1x640xf32>
    %cst_140 = arith.constant 7.07106781E-4 : f32
    %234 = vector.broadcast %cst_140 : f32 to vector<1x640xf32>
    %235 = arith.mulf %234, %233 : vector<1x640xf32>
    %236 = arith.addf %232, %235 : vector<1x640xf32>
    %237 = arith.mulf %225, %113 : vector<1x640xf32>
    %238 = arith.mulf %236, %116 : vector<1x640xf32>
    %239 = arith.subf %237, %238 : vector<1x640xf32>
    %240 = arith.mulf %225, %116 : vector<1x640xf32>
    %241 = arith.mulf %236, %113 : vector<1x640xf32>
    %242 = arith.addf %240, %241 : vector<1x640xf32>
    %c0_141 = arith.constant 0 : index
    %c0_142 = arith.constant 0 : index
    %c2_143 = arith.constant 2 : index
    %c0_144 = arith.constant 0 : index
    %c0_145 = arith.constant 0 : index
    %243 = vector.load %arg2[%c0_141, %c0_142, %c2_143, %c0_144, %c0_145] : memref<1x2x4x8x640xf32, #tpu.memory_space<vmem>>, vector<1x1x1x8x640xf32>
    %244 = vector.shape_cast %243 : vector<1x1x1x8x640xf32> to vector<8x640xf32>
    %c0_146 = arith.constant 0 : index
    %c1_147 = arith.constant 1 : index
    %c2_148 = arith.constant 2 : index
    %c0_149 = arith.constant 0 : index
    %c0_150 = arith.constant 0 : index
    %245 = vector.load %arg2[%c0_146, %c1_147, %c2_148, %c0_149, %c0_150] : memref<1x2x4x8x640xf32, #tpu.memory_space<vmem>>, vector<1x1x1x8x640xf32>
    %246 = vector.shape_cast %245 : vector<1x1x1x8x640xf32> to vector<8x640xf32>
    %247 = vector.broadcast %239 : vector<1x640xf32> to vector<8x640xf32>
    %248 = arith.mulf %247, %244 : vector<8x640xf32>
    %249 = vector.broadcast %242 : vector<1x640xf32> to vector<8x640xf32>
    %250 = arith.mulf %249, %246 : vector<8x640xf32>
    %251 = arith.addf %248, %250 : vector<8x640xf32>
    %252 = vector.broadcast %239 : vector<1x640xf32> to vector<8x640xf32>
    %253 = arith.mulf %252, %246 : vector<8x640xf32>
    %254 = vector.broadcast %242 : vector<1x640xf32> to vector<8x640xf32>
    %255 = arith.mulf %254, %244 : vector<8x640xf32>
    %256 = arith.subf %253, %255 : vector<8x640xf32>
    %257 = arith.addf %209, %251 : vector<8x640xf32>
    %258 = arith.addf %210, %256 : vector<8x640xf32>
    %c0_151 = arith.constant 0 : index
    %c0_152 = arith.constant 0 : index
    %c3_153 = arith.constant 3 : index
    %c0_154 = arith.constant 0 : index
    %c0_155 = arith.constant 0 : index
    %259 = vector.load %arg3[%c0_151, %c0_152, %c3_153, %c0_154, %c0_155] : memref<1x2x4x8x640xf32, #tpu.memory_space<vmem>>, vector<1x1x1x8x640xf32>
    %260 = vector.shape_cast %259 : vector<1x1x1x8x640xf32> to vector<8x640xf32>
    %c0_156 = arith.constant 0 : index
    %c1_157 = arith.constant 1 : index
    %c3_158 = arith.constant 3 : index
    %c0_159 = arith.constant 0 : index
    %c0_160 = arith.constant 0 : index
    %261 = vector.load %arg3[%c0_156, %c1_157, %c3_158, %c0_159, %c0_160] : memref<1x2x4x8x640xf32, #tpu.memory_space<vmem>>, vector<1x1x1x8x640xf32>
    %262 = vector.shape_cast %261 : vector<1x1x1x8x640xf32> to vector<8x640xf32>
    %263 = arith.mulf %260, %71 : vector<8x640xf32>
    %264 = arith.mulf %262, %77 : vector<8x640xf32>
    %265 = arith.subf %263, %264 : vector<8x640xf32>
    %cst_161 = arith.constant dense<0.000000e+00> : vector<640xf32>
    %266 = vector.multi_reduction <add>, %265, %cst_161 [0] : vector<8x640xf32> to vector<640xf32>
    %267 = vector.shape_cast %266 : vector<640xf32> to vector<1x640xf32>
    %cst_162 = arith.constant 1.250000e-01 : f32
    %268 = vector.broadcast %cst_162 : f32 to vector<1x640xf32>
    %269 = arith.mulf %267, %268 : vector<1x640xf32>
    %270 = arith.subf %7, %15 : vector<1x640xf32>
    %cst_163 = arith.constant 7.07106781E-4 : f32
    %271 = vector.broadcast %cst_163 : f32 to vector<1x640xf32>
    %272 = arith.mulf %271, %270 : vector<1x640xf32>
    %273 = arith.addf %269, %272 : vector<1x640xf32>
    %274 = arith.mulf %260, %77 : vector<8x640xf32>
    %275 = arith.mulf %262, %71 : vector<8x640xf32>
    %276 = arith.addf %274, %275 : vector<8x640xf32>
    %cst_164 = arith.constant dense<0.000000e+00> : vector<640xf32>
    %277 = vector.multi_reduction <add>, %276, %cst_164 [0] : vector<8x640xf32> to vector<640xf32>
    %278 = vector.shape_cast %277 : vector<640xf32> to vector<1x640xf32>
    %cst_165 = arith.constant 1.250000e-01 : f32
    %279 = vector.broadcast %cst_165 : f32 to vector<1x640xf32>
    %280 = arith.mulf %278, %279 : vector<1x640xf32>
    %281 = arith.addf %7, %15 : vector<1x640xf32>
    %cst_166 = arith.constant 7.07106781E-4 : f32
    %282 = vector.broadcast %cst_166 : f32 to vector<1x640xf32>
    %283 = arith.mulf %282, %281 : vector<1x640xf32>
    %284 = arith.addf %280, %283 : vector<1x640xf32>
    %285 = arith.mulf %273, %113 : vector<1x640xf32>
    %286 = arith.mulf %284, %116 : vector<1x640xf32>
    %287 = arith.subf %285, %286 : vector<1x640xf32>
    %288 = arith.mulf %273, %116 : vector<1x640xf32>
    %289 = arith.mulf %284, %113 : vector<1x640xf32>
    %290 = arith.addf %288, %289 : vector<1x640xf32>
    %c0_167 = arith.constant 0 : index
    %c0_168 = arith.constant 0 : index
    %c3_169 = arith.constant 3 : index
    %c0_170 = arith.constant 0 : index
    %c0_171 = arith.constant 0 : index
    %291 = vector.load %arg2[%c0_167, %c0_168, %c3_169, %c0_170, %c0_171] : memref<1x2x4x8x640xf32, #tpu.memory_space<vmem>>, vector<1x1x1x8x640xf32>
    %292 = vector.shape_cast %291 : vector<1x1x1x8x640xf32> to vector<8x640xf32>
    %c0_172 = arith.constant 0 : index
    %c1_173 = arith.constant 1 : index
    %c3_174 = arith.constant 3 : index
    %c0_175 = arith.constant 0 : index
    %c0_176 = arith.constant 0 : index
    %293 = vector.load %arg2[%c0_172, %c1_173, %c3_174, %c0_175, %c0_176] : memref<1x2x4x8x640xf32, #tpu.memory_space<vmem>>, vector<1x1x1x8x640xf32>
    %294 = vector.shape_cast %293 : vector<1x1x1x8x640xf32> to vector<8x640xf32>
    %295 = vector.broadcast %287 : vector<1x640xf32> to vector<8x640xf32>
    %296 = arith.mulf %295, %292 : vector<8x640xf32>
    %297 = vector.broadcast %290 : vector<1x640xf32> to vector<8x640xf32>
    %298 = arith.mulf %297, %294 : vector<8x640xf32>
    %299 = arith.addf %296, %298 : vector<8x640xf32>
    %300 = vector.broadcast %287 : vector<1x640xf32> to vector<8x640xf32>
    %301 = arith.mulf %300, %294 : vector<8x640xf32>
    %302 = vector.broadcast %290 : vector<1x640xf32> to vector<8x640xf32>
    %303 = arith.mulf %302, %292 : vector<8x640xf32>
    %304 = arith.subf %301, %303 : vector<8x640xf32>
    %305 = arith.addf %257, %299 : vector<8x640xf32>
    %306 = arith.addf %258, %304 : vector<8x640xf32>
    %c0_177 = arith.constant 0 : index
    %c0_178 = arith.constant 0 : index
    %c0_179 = arith.constant 0 : index
    %c0_180 = arith.constant 0 : index
    %c0_181 = arith.constant 0 : index
    %307 = vector.load %arg5[%c0_177, %c0_178, %c0_179, %c0_180, %c0_181] : memref<1x2x1x8x640xf32, #tpu.memory_space<vmem>>, vector<1x1x1x8x640xf32>
    %308 = vector.shape_cast %307 : vector<1x1x1x8x640xf32> to vector<8x640xf32>
    %309 = vector.shape_cast %305 : vector<8x640xf32> to vector<1x1x1x8x640xf32>
    tpu.vector_store %arg5[%c0_177, %c0_178, %c0_179, %c0_180, %c0_181], %309 {strides = array<i32>} : memref<1x2x1x8x640xf32, #tpu.memory_space<vmem>>, vector<1x1x1x8x640xf32>,
    %c0_182 = arith.constant 0 : index
    %c1_183 = arith.constant 1 : index
    %c0_184 = arith.constant 0 : index
    %c0_185 = arith.constant 0 : index
    %c0_186 = arith.constant 0 : index
    %310 = vector.load %arg5[%c0_182, %c1_183, %c0_184, %c0_185, %c0_186] : memref<1x2x1x8x640xf32, #tpu.memory_space<vmem>>, vector<1x1x1x8x640xf32>
    %311 = vector.shape_cast %310 : vector<1x1x1x8x640xf32> to vector<8x640xf32>
    %312 = vector.shape_cast %306 : vector<8x640xf32> to vector<1x1x1x8x640xf32>
    tpu.vector_store %arg5[%c0_182, %c1_183, %c0_184, %c0_185, %c0_186], %312 {strides = array<i32>} : memref<1x2x1x8x640xf32, #tpu.memory_space<vmem>>, vector<1x1x1x8x640xf32>,
    return
  }
  func.func @transform_0(%arg0: i32, %arg1: i32) -> (i32, i32, i32, i32, i32) {
    %c0_i32 = arith.constant 0 : i32
    %c0_i32_0 = arith.constant 0 : i32
    %c0_i32_1 = arith.constant 0 : i32
    %c0_i32_2 = arith.constant 0 : i32
    return %arg0, %c0_i32, %c0_i32_0, %c0_i32_1, %arg1 : i32, i32, i32, i32, i32
  }
  func.func @transform_1(%arg0: i32, %arg1: i32) -> (i32, i32, i32, i32, i32) {
    %c0_i32 = arith.constant 0 : i32
    %c0_i32_0 = arith.constant 0 : i32
    %c0_i32_1 = arith.constant 0 : i32
    %c0_i32_2 = arith.constant 0 : i32
    return %arg0, %c0_i32, %c0_i32_0, %c0_i32_1, %arg1 : i32, i32, i32, i32, i32
  }
  func.func @transform_2(%arg0: i32, %arg1: i32) -> (i32, i32, i32, i32) {
    %c0_i32 = arith.constant 0 : i32
    %c0_i32_0 = arith.constant 0 : i32
    %c0_i32_1 = arith.constant 0 : i32
    %c0_i32_2 = arith.constant 0 : i32
    return %c0_i32, %c0_i32_0, %c0_i32_1, %arg1 : i32, i32, i32, i32
  }
  func.func @transform_3(%arg0: i32, %arg1: i32) -> (i32, i32, i32, i32, i32) {
    %c0_i32 = arith.constant 0 : i32
    %c0_i32_0 = arith.constant 0 : i32
    %c0_i32_1 = arith.constant 0 : i32
    %c0_i32_2 = arith.constant 0 : i32
    return %arg0, %c0_i32, %c0_i32_0, %c0_i32_1, %arg1 : i32, i32, i32, i32, i32
  }
}

</mosaic_0001>

<bundles_post_ra>
// kernel: tpu_custom_call.1
= control target key start
LH: loop header
LB: loop body
LE: loop exit
PB: predicated region body
PF: predicated region fallthrough
CT: control target
= control target key end

     0   :  { %s3790_s0 = inlined_call_operand.hbm [shape: f32[2,2,4,8,640], index: 0, kind: input, shape index: {}]   ;;  %s3791_s1 = inlined_call_operand.hbm [shape: f32[2,2,4,8,640], index: 1, kind: input, shape index: {}]   ;;  %s3792_s2 = inlined_call_operand.hbm [shape: f32[2,4,1,640], index: 2, kind: input, shape index: {}]   ;;  %s3793_s3 = inlined_call_operand.hbm [shape: f32[2,2,1,8,640], index: 3, kind: output, shape index: {}]  }
   0x1   :  { %3855 = sst [smem:[#allocation40_spill]] %s3790_s0 }
   0x2   :  { %3856 = sst [smem:[#allocation41_spill]] %s3792_s2 }
   0x3   :  { %8 = vsyncpa [#allocation3], 0 }
   0x4   :  { %10 = vsyncpa [#allocation3 + $0x1], 0 }
   0x5   :  { %11 = vsyncpa [#allocation6], 0 }
   0x6   :  { %13 = vsyncpa [#allocation6 + $0x1], 0 }
   0x7   :  { %14 = vsyncpa [#allocation4], 0 }
   0x8   :  { %16 = vsyncpa [#allocation4 + $0x1], 0  ;;  %s2649_s12 = smov 0   ;;  %s2651_s13 = smov 0  }
   0x9   :  { %s2653_s14 = smov 0   ;;  %s2655_s15 = smov 0  }
   0xa   :  { %s2657_s16 = smov 0   ;;  %s2659_s17 = smov 0  }
   0xb LB: > { %3857 = sst [smem:[#allocation13_spill]] %s2604_s14  ;;  %s2680_s18 = sadd.s32 4294967295, %s2616_s17   ;;  %s2616_s17 = sphi %s2659_s17, %s22_s17   ;;  %s2612_s16 = sphi %s2657_s16, %s3990_s16   ;;  %s2608_s15 = sphi %s2655_s15, %s3989_s15   ;;  %s2604_s14 = sphi %s2653_s14, %s3985_s14   ;;  %s2600_s13 = sphi %s2651_s13, %s3988_s13   ;;  %s2596_s12 = sphi %s2649_s12, %s3987_s12  }
   0xc   : > { %s2222_s19 = sadd.s32 4294967294, %s2616_s17   ;;  %p56_p0 = scmp.ne.s32.totalorder %s2600_s13, %s2596_s12 }
   0xd   : > { %p57_p1 = scmp.eq.s32.totalorder %s2680_s18, 0  ;;  %p142_p3 = scmp.eq.s32.totalorder %s2222_s19, 1 }
   0xe   : > { %p2223_p5 = scmp.ge.s32.totalorder %s2616_s17, 1  ;;  %p149_p7 = scmp.lt.s32.totalorder %s2616_s17, 3 }
   0xf   : > { %p2689_p4 = por %p57_p1, %p56_p0  ;;  %p2694_p6 = por %p142_p3, %p56_p0 }
  0x10   : > { %p2699_p8 = pnand %p2223_p5, %p149_p7  ;;  %s2618_s23 = smov [#allocation7]  }
  0x11   : > { %s3859_s21 = scalar_select %p2694_p6, 1, 0 }
  0x12   : > { %s164_s24 = sshll.u32 %s2618_s23, 4  ;;  %p2325_p9 = pneg %p2699_p8  ;;  %s165_s24 = int_to_ptr.vmem [resolvable:$true] %s164_s24 }
  0x13   : > { %p2225_p10 = scmp.ge.s32.totalorder %s2616_s17, 2  ;;  %s34_s26 = sadd.s32 1, %s2612_s16 }
  0x14   : > { %p2708_p11 = pnand %p2325_p9, %p57_p1  ;;  %s2457_s27 = scalar_lea.vmem %s165_s24, 640 }
  0x15   : > { %p2458_p13 = scmp.ne.s32.totalorder %s165_s24, %s2457_s27  ;;  %p2465_p5 = scmp.lt.s32.totalorder %s165_s24, %s165_s24 }
  0x16   : > { %p2448_p12 = pneg %p2708_p11  ;;  %p2466_p7 = scmp.lt.s32.totalorder %s2457_s27, %s2457_s27 }
  0x18   : > { %p2460_p0 = pnand %p2458_p13, %p2448_p12  ;;  %p2467_p2 = por %p2466_p7, %p2465_p5 }
  0x1a   : > { %p2461_p3 = pneg %p2460_p0 }
  0x1c   : > { %p2468_p6 = pnand %p2467_p2, %p2461_p3 }
  0x1e   : > { %2471 = shalt.err (!%p2468_p6)
}
  0x1f   : > { %s2619_s28 = smov 80   ;;  %s2620_s29 = smov 5  }
  0x20   : > { %s3862_s2 = sld [smem:[#allocation41_spill]]  ;;  %p36_p2 = scmp.ge.s32.totalorder %s34_s26, 2 }
  0x21   : > { %s43_s5 = sadd.s32 1, %s2604_s14  ;;  %p50_p6 = scmp.ne.s32.totalorder %s2604_s14, %s2600_s13 }
  0x22   : > { %p51_p9 = scmp.eq.s32.totalorder %s2616_s17, 0  ;;  %s3992_s26 = smov (%p36_p2, %s34_s26), 0 }
  0x23   : > { %3863 = sst [smem:[#allocation14_spill]] %s3992_s26  ;;  %p3864_p13 = scmp.eq.s32.totalorder %s2680_s18, 1 }
  0x24   : > { %p52_p12 = por %p51_p9, %p50_p6  ;;  %s38_s7 = ssub.s32 %s2612_s16, %s3992_s26 }
  0x25   : > { %p2728_p0 = por %p3864_p13, %p50_p6  ;;  %p2341_p3 = scmp.lt.s32.totalorder %s2616_s17, 2 }
  0x26   : > { %2328 = dma.hbm_to_vmem [thread:$0]  (!%p2708_p11), %s3862_s2, 640, %s165_s24, [#allocation6], %s2619_s28, %s2619_s28, %s2620_s29  }
  0x27   : > { %p41_p5 = scmp.eq.s32.totalorder %s38_s7, 0  ;;  %s178_s8 = sand.u32 1, %s2604_s14  }
  0x28   : > { %s2736_s9 = smul.u32 320, %s178_s8  ;;  %p2743_p11 = pnand %p2341_p3, %p52_p12 }
  0x29   : > { %s2739_s10 = scalar_select %p41_p5, %s2604_s14, %s43_s5  }
  0x2a   : > { %s2309_s11 = smul.u32 5120, %s2612_s16  ;;  %s182_s19 = scalar_lea.vmem [#allocation2], %s2736_s9 }
  0x2b   : > { %3866 = sst [smem:[#allocation15_spill]] %s2739_s10  ;;  %s191_s23 = sshll.u32 %s182_s19, 4  ;;  %s192_s23 = int_to_ptr.vmem [resolvable:$true] %s191_s23 }
  0x2c   : > { %s3868_s0 = sld [smem:[#allocation40_spill]]  ;;  %s201_s29 = sand.u32 1, %s2616_s17  }
  0x2d   : > { %s179_s30 = scalar_lea.sflag [#allocation3], %s178_s8  ;;  %p2474_p7 = pneg %p2743_p11 }
  0x2e   : > { %s2485_s4 = scalar_lea.vmem %s192_s23, 5120  ;;  %s2621_s5 = smov [#allocation2]  }
  0x2f   : > { %p2486_p2 = scmp.ne.s32.totalorder %s192_s23, %s2485_s4  ;;  %s2490_s7 = sshll.u32 %s2621_s5, 4  ;;  %s2491_s7 = int_to_ptr.vmem [resolvable:$false] %s2490_s7 }
  0x30   : > { %s2492_s19 = scalar_lea.vmem %s2491_s7, 10240  ;;  %p2493_p12 = scmp.lt.s32.totalorder %s192_s23, %s2491_s7 }
  0x31   : > { %p2488_p6 = pnand %p2486_p2, %p2474_p7  ;;  %p2494_p13 = scmp.lt.s32.totalorder %s2492_s19, %s2485_s4 }
  0x32   : > { %s190_s28 = scalar_lea.hbm %s3868_s0, %s2309_s11 }
  0x33   : > { %p2489_p9 = pneg %p2488_p6  ;;  %p2495_p3 = por %p2494_p13, %p2493_p12 }
  0x35   : > { %p2496_p5 = pnand %p2495_p3, %p2489_p9 }
  0x37   : > { %2499 = shalt.err (!%p2496_p5)
}
  0x38   : > { %s2622_s25 = smov 640   ;;  %s2623_s8 = smov 40  }
  0x39   : > { %2332 = dma.hbm_to_vmem [thread:$0]  (!%p2743_p11), %s190_s28, 5120, %s192_s23, %s179_s30, %s2622_s25, %s2622_s25, %s2623_s8  }
  0x3a   : > { %s213_s5 = scalar_lea.hbm %s3791_s1, %s2309_s11  ;;  %s205_s2 = scalar_lea.vmem [#allocation5], %s2736_s9 }
  0x3b   : > { %s214_s26 = sshll.u32 %s205_s2, 4  ;;  %s202_s4 = scalar_lea.sflag [#allocation6], %s201_s29  ;;  %s215_s26 = int_to_ptr.vmem [resolvable:$true] %s214_s26 }
  0x3c   : > { %s2513_s7 = scalar_lea.vmem %s215_s26, 5120  ;;  %s2624_s19 = smov [#allocation5]  }
  0x3d   : > { %p2514_p2 = scmp.ne.s32.totalorder %s215_s26, %s2513_s7  ;;  %s2518_s10 = sshll.u32 %s2624_s19, 4  ;;  %s2519_s10 = int_to_ptr.vmem [resolvable:$false] %s2518_s10 }
  0x3e   : > { %s2520_s14 = scalar_lea.vmem %s2519_s10, 10240  ;;  %p2521_p12 = scmp.lt.s32.totalorder %s215_s26, %s2519_s10 }
  0x3f   : > { %p2516_p6 = pnand %p2514_p2, %p2474_p7  ;;  %p2522_p13 = scmp.lt.s32.totalorder %s2520_s14, %s2513_s7 }
  0x41   : > { %p2517_p9 = pneg %p2516_p6  ;;  %p2523_p3 = por %p2522_p13, %p2521_p12 }
  0x43   : > { %p2524_p5 = pnand %p2523_p3, %p2517_p9 }
  0x45   : > { %2527 = shalt.err (!%p2524_p5)
}
  0x46   : > { %2335 = dma.hbm_to_vmem [thread:$0]  (!%p2743_p11), %s213_s5, 5120, %s215_s26, %s202_s4, %s2622_s25, %s2622_s25, %s2623_s8  }
  0x47   : > { %226 = sbr.rel (%p2699_p8) target bundleno = 396 (0x18c), region = 32 }
  0x4c   : > { %s2774_s0 = sand.u32 1, %s2600_s13  }
  0x4d   : > { %s2312_s2 = smul.u32 320, %s2774_s0  ;;  %s229_s9 = scalar_lea.sflag [#allocation3], %s2774_s0 }
  0x4f   : > { %s2778_s11 = scalar_lea.vmem [#allocation2], %s2312_s2 }
  0x50   : > { %2579 = dma.done.wait (%p2689_p4), %s229_s9, 5120  }
  0x51   : > { %2581 = vsyncadd (%p2689_p4), %s229_s9, 4294962176  ;;  %s237_s14 = sand.u32 1, %s2680_s18   ;;  %s2785_s26 = scalar_lea.vmem [#allocation5], %s2312_s2 }
  0x52   : > { %s238_s22 = scalar_lea.sflag [#allocation6], %s237_s14 }
  0x53   : > { %2583 = dma.done.wait (%p2689_p4), %s238_s22, 5120  }
  0x54   : > { %2585 = vsyncadd (%p2689_p4), %s238_s22, 4294962176 }
  0x55   : > { %2587 = dma.done.wait (%p57_p1), [#allocation6], 640  }
  0x56   : > { %2589 = vsyncadd (%p57_p1), [#allocation6], 4294966656  ;;  %v304_v0 = vlaneseq  ;;  %v2625_v1 = vmov 1966171168   ;;  %v2805_v10 = vld [vmem:[#allocation7] sm:$0x1f] }
  0x57   : > { %v865_v2 = vunpack.c.l.s4 %v2625_v1  ;;  %v2807_v11 = vld [vmem:[#allocation7 + $0x5] sm:$0x1f]  ;;  %v2811_v13 = vld [vmem:[#allocation7 + $0x14] sm:$0x1f]  ;;  %v2900_v63 = vld [vmem:[#allocation7 + $0x19] sm:$0x1f] }
  0x58   : > { %v305_v3 = vshrl.u32 %v304_v0, 7  ;;  %v2822_v18 = vld [vmem:[%s2785_s26] sm:$0xff]  ;;  %v2833_v23 = vld [vmem:[%s2785_s26 + $0x8] sm:$0xff]  ;;  %v2836_v24 = vld [vmem:[%s2785_s26 + $0x10] sm:$0xff]  ;;  %s2313_s18 = smul.u32 80, %s2774_s0  ;;  %s2082_s29 = scalar_lea.sflag [#allocation4], %s2774_s0 }
  0x59   : > { %v866_v4 = vunpack.c.0.s8 %v865_v2  ;;  %v2839_v25 = vld [vmem:[%s2785_s26 + $0x18] sm:$0xff]  ;;  %v2851_v30 = vld [vmem:[%s2785_s26 + $0x20] sm:$0xff]  ;;  %v2857_v32 = vld [vmem:[%s2785_s26 + $0xa8] sm:$0xff]  ;;  %s2314_s20 = smul.u32 1280, %s2608_s15  ;;  %s2626_s25 = smov [#allocation8]  }
  0x5a   : > { %v2795_v5 = vsub.s32 0, %v305_v3  ;;  %v2797_v6 = vsub.s32 1, %v305_v3  ;;  %v2799_v7 = vsub.s32 2, %v305_v3  ;;  %v2801_v8 = vsub.s32 3, %v305_v3  ;;  %3872 = vst [vmem:[#allocation19_spill] sm:$0xff] %v2839_v25  ;;  %3873 = vst [vmem:[#allocation20_spill] sm:$0xff] %v2851_v30 }
  0x5b   : > { %v2803_v9 = vsub.s32 4, %v305_v3  ;;  %v2809_v12 = vsub.s32 %v866_v4, %v305_v3  ;;  %v2854_v31 = vld [vmem:[%s2785_s26 + $0xa0] sm:$0xff]  ;;  %3875 = vst [vmem:[#allocation22_spill] sm:$0xff] %v2857_v32  ;;  %v2866_v37 = vld [vmem:[%s2785_s26 + $0xb0] sm:$0xff]  ;;  %v2869_v38 = vld [vmem:[%s2785_s26 + $0xb8] sm:$0xff]  ;;  %s272_s10 = scalar_lea.vmem [#allocation8], %s2313_s18  ;;  %s3737_s28 = scalar_lea.hbm %s3793_s3, %s2314_s20 }
  0x5c   : > { %3869 = vst [vmem:[#allocation16_spill] sm:$0xff] %v2801_v8  ;;  %v307_v14 = vrot.slane %v2805_v10, %v2795_v5  ;;  %v311_v15 = vrot.slane %v2805_v10, %v2797_v6  ;;  %v315_v16 = vrot.slane %v2805_v10, %v2799_v7  ;;  %v319_v17 = vrot.slane %v2805_v10, %v2801_v8  ;;  %v2872_v39 = vld [vmem:[%s2785_s26 + $0xc0] sm:$0xff]  ;;  %v2235_v60 = vld [vmem:[%s2785_s26 + $0x28] sm:$0xff]  ;;  %v2236_v61 = vld [vmem:[%s2785_s26 + $0x30] sm:$0xff]  ;;  %s2097_s23 = sshll.u32 %s272_s10, 4  ;;  %s2532_s8 = sshll.u32 %s2626_s25, 4  ;;  %s3739_s23 = int_to_ptr.vmem [resolvable:$true] %s2097_s23  ;;  %s2533_s8 = int_to_ptr.vmem [resolvable:$false] %s2532_s8 }
  0x5d   : > { %3870 = vst [vmem:[#allocation17_spill] sm:$0xff] %v2803_v9  ;;  %3871 = vst [vmem:[#allocation18_spill] sm:$0xff] %v2809_v12  ;;  %v323_v19 = vrot.slane %v2805_v10, %v2803_v9  ;;  %v338_v20 = vrot.slane %v2811_v13, %v2795_v5  ;;  %v342_v21 = vrot.slane %v2811_v13, %v2797_v6  ;;  %v2237_v62 = vld [vmem:[%s2785_s26 + $0x38] sm:$0xff]  ;;  %v2238_v1 = vld [vmem:[%s2785_s26 + $0x40] sm:$0xff]  ;;  %s2528_s30 = scalar_lea.vmem %s3739_s23, 1280  ;;  %s2534_s27 = scalar_lea.vmem %s2533_s8, 2560 }
  0x5e   : > { %v346_v22 = vrot.slane %v2811_v13, %v2799_v7  ;;  %v329_v26 = vmul.f32 %v307_v14, %v2822_v18  ;;  %v350_v27 = vrot.slane %v2811_v13, %v2801_v8  ;;  %v354_v28 = vrot.slane %v2811_v13, %v2803_v9  ;;  %3874 = vst [vmem:[#allocation21_spill] sm:$0xff] %v2854_v31  ;;  %p2529_p1 = scmp.ne.s32.totalorder %s3739_s23, %s2528_s30  ;;  %p2535_p11 = scmp.lt.s32.totalorder %s3739_s23, %s2533_s8 }
  0x5f   : > { %v2848_v29 = vrot.slane %v2807_v11, %v2795_v5  ;;  %v330_v33 = vmul.f32 %v311_v15, %v2833_v23  ;;  %v331_v34 = vmul.f32 %v315_v16, %v2836_v24  ;;  %v332_v35 = vmul.f32 %v319_v17, %v2839_v25  ;;  %3876 = vst [vmem:[#allocation23_spill] sm:$0xff] %v2866_v37  ;;  %p2536_p7 = scmp.lt.s32.totalorder %s2534_s27, %s2528_s30 }
  0x60   : > { %v2863_v36 = vmul.f32 %v338_v20, %v2822_v18  ;;  %3877 = vst [vmem:[#allocation24_spill] sm:$0xff] %v2869_v38  ;;  %3878 = vst [vmem:[#allocation25_spill] sm:$0xff] %v2872_v39  ;;  %v333_v40 = vmul.f32 %v323_v19, %v2851_v30  ;;  %v360_v41 = vmul.f32 %v2854_v31, %v338_v20  ;;  %v2240_v20 = vld [vmem:[%s2785_s26 + $0xc8] sm:$0xff]  ;;  %p2530_p4 = pnand %p2529_p1, %p2728_p0 }
  0x61   : > { %v361_v42 = vmul.f32 %v2857_v32, %v342_v21  ;;  %v2878_v43 = vmul.f32 %v342_v21, %v2833_v23  ;;  %v362_v44 = vmul.f32 %v2866_v37, %v346_v22  ;;  %v363_v45 = vmul.f32 %v2869_v38, %v350_v27  ;;  %p2537_p2 = por %p2536_p7, %p2535_p11 }
  0x62   : > { %v364_v46 = vmul.f32 %v2872_v39, %v354_v28  ;;  %v2884_v47 = vmul.f32 %v346_v22, %v2836_v24  ;;  %v365_v48 = vadd.f32 %v360_v41, %v329_v26  ;;  %v2887_v50 = vmul.f32 %v350_v27, %v2839_v25  ;;  %v2243_v41 = vld [vmem:[%s2785_s26 + $0xe0] sm:$0xff]  ;;  %p2531_p8 = pneg %p2530_p4 }
  0x63   : > { %v366_v49 = vadd.f32 %v361_v42, %v330_v33  ;;  %v2890_v51 = vmul.f32 %v354_v28, %v2851_v30  ;;  %v367_v52 = vadd.f32 %v362_v44, %v331_v34  ;;  %v368_v53 = vadd.f32 %v363_v45, %v332_v35  ;;  %v2241_v28 = vld [vmem:[%s2785_s26 + $0xd0] sm:$0xff]  ;;  %v2242_v33 = vld [vmem:[%s2785_s26 + $0xd8] sm:$0xff]  ;;  %v2244_v42 = vld [vmem:[%s2785_s26 + $0xe8] sm:$0xff] }
  0x64   : > { %v369_v54 = vadd.f32 %v364_v46, %v333_v40  ;;  %v375_v55 = vmul.f32 %v2854_v31, %v307_v14  ;;  %v376_v56 = vmul.f32 %v2857_v32, %v311_v15  ;;  %v377_v57 = vmul.f32 %v2866_v37, %v315_v16  ;;  %p2538_p6 = pnand %p2537_p2, %p2531_p8 }
  0x65   : > { %v378_v58 = vmul.f32 %v2869_v38, %v319_v17  ;;  %v379_v59 = vmul.f32 %v2872_v39, %v323_v19  ;;  %v405_v2 = vrot.slane %v2807_v11, %v2797_v6  ;;  %v409_v3 = vrot.slane %v2807_v11, %v2799_v7  ;;  %v2239_v19 = vld [vmem:[%s2785_s26 + $0x48] sm:$0xff] }
  0x66   : > { %v380_v0 = vsub.f32 %v2863_v36, %v375_v55  ;;  %v413_v4 = vrot.slane %v2807_v11, %v2801_v8  ;;  %v381_v14 = vsub.f32 %v2878_v43, %v376_v56  ;;  %v382_v15 = vsub.f32 %v2884_v47, %v377_v57 }
  0x67   : > { %v383_v16 = vsub.f32 %v2887_v50, %v378_v58  ;;  %v384_v17 = vsub.f32 %v2890_v51, %v379_v59  ;;  %v417_v21 = vrot.slane %v2807_v11, %v2803_v9  ;;  %v423_v22 = vmul.f32 %v2235_v60, %v2848_v29 }
  0x68   : > { %v424_v26 = vmul.f32 %v2236_v61, %v405_v2  ;;  %v425_v27 = vmul.f32 %v2237_v62, %v409_v3  ;;  %v426_v34 = vmul.f32 %v2238_v1, %v413_v4  ;;  %v437_v35 = vrot.slane %v2900_v63, %v2795_v5 }
  0x69   : > { %v441_v36 = vrot.slane %v2900_v63, %v2797_v6  ;;  %v445_v40 = vrot.slane %v2900_v63, %v2799_v7  ;;  %v427_v43 = vmul.f32 %v2239_v19, %v417_v21  ;;  %v428_v44 = vadd.f32 %v423_v22, %v365_v48 }
  0x6a   : > { %v429_v45 = vadd.f32 %v424_v26, %v366_v49  ;;  %v430_v46 = vadd.f32 %v425_v27, %v367_v52  ;;  %v431_v47 = vadd.f32 %v426_v34, %v368_v53  ;;  %v449_v50 = vrot.slane %v2900_v63, %v2801_v8  ;;  %v2933_v53 = vld [vmem:[#allocation7 + $0xa] sm:$0x1f] }
  0x6b   : > { %v453_v51 = vrot.slane %v2900_v63, %v2803_v9  ;;  %v459_v55 = vmul.f32 %v2240_v20, %v437_v35  ;;  %v432_v56 = vadd.f32 %v427_v43, %v369_v54  ;;  %v460_v57 = vmul.f32 %v2241_v28, %v441_v36  ;;  %v2251_v43 = vld [vmem:[%s2785_s26 + $0xf8] sm:$0xff] }
  0x6c   : > { %v461_v58 = vmul.f32 %v2242_v33, %v445_v40  ;;  %v469_v59 = vmul.f32 %v2235_v60, %v437_v35  ;;  %v462_v12 = vmul.f32 %v2243_v41, %v449_v50  ;;  %v470_v37 = vmul.f32 %v2236_v61, %v441_v36 }
  0x6d   : > { %v463_v39 = vmul.f32 %v2244_v42, %v453_v51  ;;  %v464_v38 = vadd.f32 %v459_v55, %v428_v44  ;;  %v465_v32 = vadd.f32 %v460_v57, %v429_v45  ;;  %v471_v49 = vmul.f32 %v2237_v62, %v445_v40  ;;  %v2947_v40 = vld [vmem:[#allocation7 + $0x1e] sm:$0x1f]  ;;  %v2254_v55 = vld [vmem:[%s2785_s26 + $0x110] sm:$0xff] }
  0x6e   : > { %v466_v48 = vadd.f32 %v461_v58, %v430_v46  ;;  %v472_v52 = vmul.f32 %v2238_v1, %v449_v50  ;;  %v467_v22 = vadd.f32 %v462_v12, %v431_v47  ;;  %v473_v27 = vmul.f32 %v2239_v19, %v453_v51  ;;  %v2249_v19 = vld [vmem:[%s2785_s26 + $0x70] sm:$0xff]  ;;  %v2252_v50 = vld [vmem:[%s2785_s26 + $0x100] sm:$0xff]  ;;  %v2253_v51 = vld [vmem:[%s2785_s26 + $0x108] sm:$0xff] }
  0x6f   : > { %v468_v26 = vadd.f32 %v463_v39, %v432_v56  ;;  %v2935_v54 = vadd.f32 %v469_v59, %v380_v0  ;;  %v2937_v34 = vadd.f32 %v470_v37, %v381_v14  ;;  %v2939_v60 = vadd.f32 %v471_v49, %v382_v15  ;;  %v2245_v39 = vld [vmem:[%s2785_s26 + $0x50] sm:$0xff]  ;;  %v2246_v14 = vld [vmem:[%s2785_s26 + $0x58] sm:$0xff]  ;;  %v2247_v15 = vld [vmem:[%s2785_s26 + $0x60] sm:$0xff] }
  0x70   : > { %v2941_v35 = vadd.f32 %v472_v52, %v383_v16  ;;  %v479_v61 = vmul.f32 %v2240_v20, %v2848_v29  ;;  %v2944_v62 = vadd.f32 %v473_v27, %v384_v17  ;;  %v480_v1 = vmul.f32 %v2241_v28, %v405_v2  ;;  %v2248_v17 = vld [vmem:[%s2785_s26 + $0x68] sm:$0xff] }
  0x71   : > { %v481_v12 = vmul.f32 %v2242_v33, %v409_v3  ;;  %v482_v36 = vmul.f32 %v2243_v41, %v413_v4  ;;  %v483_v0 = vmul.f32 %v2244_v42, %v417_v21  ;;  %v505_v29 = vrot.slane %v2933_v53, %v2795_v5  ;;  %v2250_v42 = vld [vmem:[%s2785_s26 + $0xf0] sm:$0xff] }
  0x72   : > { %v484_v37 = vsub.f32 %v2935_v54, %v479_v61  ;;  %v509_v16 = vrot.slane %v2933_v53, %v2797_v6  ;;  %v485_v2 = vsub.f32 %v2937_v34, %v480_v1  ;;  %v513_v20 = vrot.slane %v2933_v53, %v2799_v7 }
  0x73   : > { %v486_v3 = vsub.f32 %v2939_v60, %v481_v12  ;;  %v487_v4 = vsub.f32 %v2941_v35, %v482_v36  ;;  %v488_v21 = vsub.f32 %v2944_v62, %v483_v0  ;;  %v517_v28 = vrot.slane %v2933_v53, %v2801_v8 }
  0x74   : > { %v521_v33 = vrot.slane %v2933_v53, %v2803_v9  ;;  %v527_v41 = vmul.f32 %v2245_v39, %v505_v29  ;;  %v528_v44 = vmul.f32 %v2246_v14, %v509_v16  ;;  %v529_v45 = vmul.f32 %v2247_v15, %v513_v20 }
  0x75   : > { %v541_v46 = vrot.slane %v2947_v40, %v2795_v5  ;;  %v545_v47 = vrot.slane %v2947_v40, %v2797_v6  ;;  %v530_v56 = vmul.f32 %v2248_v17, %v517_v28  ;;  %v549_v59 = vrot.slane %v2947_v40, %v2799_v7 }
  0x76   : > { %v531_v57 = vmul.f32 %v2249_v19, %v521_v33  ;;  %v532_v58 = vadd.f32 %v527_v41, %v464_v38  ;;  %v533_v49 = vadd.f32 %v528_v44, %v465_v32  ;;  %v534_v52 = vadd.f32 %v529_v45, %v466_v48  ;;  %v2983_v32 = vld [vmem:[#allocation7 + $0xf] sm:$0x1f] }
  0x77   : > { %v553_v27 = vrot.slane %v2947_v40, %v2801_v8  ;;  %v557_v54 = vrot.slane %v2947_v40, %v2803_v9  ;;  %v535_v34 = vadd.f32 %v530_v56, %v467_v22  ;;  %v563_v35 = vmul.f32 %v2250_v42, %v541_v46 }
  0x78   : > { %v536_v60 = vadd.f32 %v531_v57, %v468_v26  ;;  %v564_v61 = vmul.f32 %v2251_v43, %v545_v47  ;;  %v565_v62 = vmul.f32 %v2252_v50, %v549_v59  ;;  %v573_v36 = vmul.f32 %v2245_v39, %v541_v46 }
  0x79   : > { %v566_v1 = vmul.f32 %v2253_v51, %v553_v27  ;;  %v567_v12 = vmul.f32 %v2254_v55, %v557_v54  ;;  %v568_v38 = vadd.f32 %v563_v35, %v532_v58  ;;  %v574_v41 = vmul.f32 %v2246_v14, %v545_v47  ;;  %v2264_v35 = vld [vmem:[%s2785_s26 + $0x138] sm:$0xff] }
  0x7a   : > { %v569_v0 = vadd.f32 %v564_v61, %v533_v49  ;;  %v575_v31 = vmul.f32 %v2247_v15, %v549_v59  ;;  %v570_v48 = vadd.f32 %v565_v62, %v534_v52  ;;  %v576_v30 = vmul.f32 %v2248_v17, %v553_v27  ;;  %v2987_v15 = vld [vmem:[#allocation7 + $0x23] sm:$0x1f]  ;;  %v2255_v49 = vld [vmem:[%s2785_s26 + $0x78] sm:$0xff]  ;;  %v2263_v52 = vld [vmem:[%s2785_s26 + $0x130] sm:$0xff] }
  0x7b   : > { %v571_v44 = vadd.f32 %v566_v1, %v535_v34  ;;  %v572_v45 = vadd.f32 %v567_v12, %v536_v60  ;;  %v577_v22 = vmul.f32 %v2249_v19, %v557_v54  ;;  %v578_v26 = vadd.f32 %v573_v36, %v484_v37  ;;  %v2256_v17 = vld [vmem:[%s2785_s26 + $0x80] sm:$0xff] }
  0x7c   : > { %v579_v56 = vadd.f32 %v574_v41, %v485_v2  ;;  %v580_v57 = vadd.f32 %v575_v31, %v486_v3  ;;  %v2985_v25 = vadd.f32 %v576_v30, %v487_v4  ;;  %v583_v39 = vmul.f32 %v2250_v42, %v505_v29  ;;  %v2257_v29 = vld [vmem:[%s2785_s26 + $0x88] sm:$0xff] }
  0x7d   : > { %v584_v46 = vmul.f32 %v2251_v43, %v509_v16  ;;  %v585_v14 = vmul.f32 %v2252_v50, %v513_v20  ;;  %v582_v47 = vadd.f32 %v577_v22, %v488_v21  ;;  %v586_v58 = vmul.f32 %v2253_v51, %v517_v28  ;;  %v2258_v16 = vld [vmem:[%s2785_s26 + $0x90] sm:$0xff]  ;;  %v2259_v20 = vld [vmem:[%s2785_s26 + $0x98] sm:$0xff] }
  0x7e   : > { %v587_v59 = vmul.f32 %v2254_v55, %v521_v33  ;;  %v609_v37 = vrot.slane %v2983_v32, %v2795_v5  ;;  %v588_v2 = vsub.f32 %v578_v26, %v583_v39  ;;  %v613_v3 = vrot.slane %v2983_v32, %v2797_v6  ;;  %v2260_v33 = vld [vmem:[%s2785_s26 + $0x118] sm:$0xff]  ;;  %v2261_v55 = vld [vmem:[%s2785_s26 + $0x120] sm:$0xff] }
  0x7f   : > { %v589_v31 = vsub.f32 %v579_v56, %v584_v46  ;;  %v590_v30 = vsub.f32 %v580_v57, %v585_v14  ;;  %v591_v4 = vsub.f32 %v2985_v25, %v586_v58  ;;  %v617_v21 = vrot.slane %v2983_v32, %v2799_v7  ;;  %v2262_v25 = vld [vmem:[%s2785_s26 + $0x128] sm:$0xff] }
  0x80   : > { %v592_v19 = vsub.f32 %v582_v47, %v587_v59  ;;  %v621_v28 = vrot.slane %v2983_v32, %v2801_v8  ;;  %v625_v42 = vrot.slane %v2983_v32, %v2803_v9  ;;  %v631_v43 = vmul.f32 %v2255_v49, %v609_v37 }
  0x81   : > { %v632_v50 = vmul.f32 %v2256_v17, %v613_v3  ;;  %v645_v51 = vrot.slane %v2987_v15, %v2795_v5  ;;  %v633_v27 = vmul.f32 %v2257_v29, %v617_v21  ;;  %v649_v34 = vrot.slane %v2987_v15, %v2797_v6 }
  0x82   : > { %v634_v54 = vmul.f32 %v2258_v16, %v621_v28  ;;  %v653_v60 = vrot.slane %v2987_v15, %v2799_v7  ;;  %v635_v61 = vmul.f32 %v2259_v20, %v625_v42  ;;  %v636_v62 = vadd.f32 %v631_v43, %v568_v38 }
  0x83   : > { %v637_v1 = vadd.f32 %v632_v50, %v569_v0  ;;  %v657_v12 = vrot.slane %v2987_v15, %v2801_v8  ;;  %v638_v36 = vadd.f32 %v633_v27, %v570_v48  ;;  %v661_v22 = vrot.slane %v2987_v15, %v2803_v9 }
  0x84   : > { %v639_v41 = vadd.f32 %v634_v54, %v571_v44  ;;  %v667_v26 = vmul.f32 %v2260_v33, %v645_v51  ;;  %v640_v56 = vadd.f32 %v635_v61, %v572_v45  ;;  %v668_v57 = vmul.f32 %v2261_v55, %v649_v34 }
  0x85   : > { %v669_v39 = vmul.f32 %v2262_v25, %v653_v60  ;;  %v670_v46 = vmul.f32 %v2263_v52, %v657_v12  ;;  %v671_v14 = vmul.f32 %v2264_v35, %v661_v22  ;;  %v677_v58 = vmul.f32 %v2255_v49, %v645_v51 }
  0x86   : > { %v3020_v47 = vadd.f32 %v667_v26, %v636_v62  ;;  %v678_v59 = vmul.f32 %v2256_v17, %v649_v34  ;;  %v3022_v38 = vadd.f32 %v668_v57, %v637_v1  ;;  %v679_v48 = vmul.f32 %v2257_v29, %v653_v60  ;;  %v3887_v57 = vld [vmem:[#allocation19_spill] sm:$0xff] }
  0x87   : > { %v3024_v0 = vadd.f32 %v669_v39, %v638_v36  ;;  %v3026_v43 = vadd.f32 %v670_v46, %v639_v41  ;;  %v3028_v44 = vadd.f32 %v671_v14, %v640_v56  ;;  %v680_v50 = vmul.f32 %v2258_v16, %v657_v12 }
  0x88   : > { %v681_v27 = vmul.f32 %v2259_v20, %v661_v22  ;;  %v682_v45 = vadd.f32 %v677_v58, %v588_v2  ;;  %v683_v54 = vadd.f32 %v678_v59, %v589_v31  ;;  %v684_v61 = vadd.f32 %v679_v48, %v590_v30 }
  0x89   : > { %3879 = vst [vmem:[#allocation26_spill] sm:$0xff] %v3024_v0  ;;  %3880 = vst [vmem:[#allocation27_spill] sm:$0xff] %v3026_v43  ;;  %v687_v9 = vmul.f32 %v2260_v33, %v609_v37  ;;  %v688_v8 = vmul.f32 %v2261_v55, %v613_v3  ;;  %v685_v62 = vadd.f32 %v680_v50, %v591_v4 }
  0x8a   : > { %3881 = vst [vmem:[#allocation28_spill] sm:$0xff] %v3028_v44  ;;  %v686_v26 = vadd.f32 %v681_v27, %v592_v19  ;;  %v689_v49 = vmul.f32 %v2262_v25, %v617_v21  ;;  %v690_v17 = vmul.f32 %v2263_v52, %v621_v28  ;;  %v691_v51 = vmul.f32 %v2264_v35, %v625_v42  ;;  %v3888_v27 = vld [vmem:[#allocation20_spill] sm:$0xff] }
  0x8b   : > { %v3030_v34 = vsub.f32 %v682_v45, %v687_v9  ;;  %v3032_v1 = vsub.f32 %v683_v54, %v688_v8  ;;  %v697_v29 = vmul.f32 %v2805_v10, %v2805_v10  ;;  %v698_v37 = vmul.f32 %v2811_v13, %v2811_v13  ;;  %v3889_v54 = vld [vmem:[#allocation21_spill] sm:$0xff] }
  0x8c   : > { %v3036_v60 = vsub.f32 %v684_v61, %v689_v49  ;;  %v3038_v16 = vsub.f32 %v685_v62, %v690_v17  ;;  %v700_v2 = vmul.f32 %v2807_v11, %v2807_v11  ;;  %v3044_v31 = vsub.f32 %v686_v26, %v691_v51 }
  0x8d   : > { %3882 = vst [vmem:[#allocation29_spill] sm:$0xff] %v3030_v34  ;;  %3883 = vst [vmem:[#allocation30_spill] sm:$0xff] %v3032_v1  ;;  %v702_v9 = vmul.f32 %v2900_v63, %v2900_v63  ;;  %v704_v8 = vmul.f32 %v2933_v53, %v2933_v53  ;;  %v706_v30 = vmul.f32 %v2947_v40, %v2947_v40 }
  0x8e   : > { %3884 = vst [vmem:[#allocation31_spill] sm:$0xff] %v3036_v60  ;;  %3885 = vst [vmem:[#allocation32_spill] sm:$0xff] %v3038_v16  ;;  %v699_v3 = vadd.f32 %v698_v37, %v697_v29  ;;  %v708_v4 = vmul.f32 %v2983_v32, %v2983_v32  ;;  %v710_v19 = vmul.f32 %v2987_v15, %v2987_v15  ;;  %v3890_v37 = vld [vmem:[#allocation22_spill] sm:$0xff] }
  0x8f   : > { %3886 = vst [vmem:[#allocation33_spill] sm:$0xff] %v3044_v31  ;;  %v712_v11 = vmul.f32 %v3020_v47, %v3020_v47  ;;  %v713_v20 = vmul.f32 %v3022_v38, %v3022_v38  ;;  %v714_v63 = vmul.f32 %v3024_v0, %v3024_v0  ;;  %v715_v53 = vmul.f32 %v3026_v43, %v3026_v43 }
  0x90   : > { %v716_v40 = vmul.f32 %v3028_v44, %v3028_v44  ;;  %v701_v21 = vadd.f32 %v700_v2, %v699_v3  ;;  %v717_v32 = vmul.f32 %v3030_v34, %v3030_v34  ;;  %v718_v15 = vmul.f32 %v3032_v1, %v3032_v1 }
  0x91   : > { %v719_v28 = vmul.f32 %v3036_v60, %v3036_v60  ;;  %v720_v33 = vmul.f32 %v3038_v16, %v3038_v16  ;;  %v721_v42 = vmul.f32 %v3044_v31, %v3044_v31  ;;  %v903_v55 = vmul.f32 %v3020_v47, %v2822_v18 }
  0x92   : > { %v904_v25 = vmul.f32 %v3022_v38, %v2833_v23  ;;  %v703_v52 = vadd.f32 %v702_v9, %v701_v21  ;;  %v722_v35 = vadd.f32 %v717_v32, %v712_v11  ;;  %v723_v12 = vadd.f32 %v718_v15, %v713_v20  ;;  %v3891_v9 = vld [vmem:[#allocation23_spill] sm:$0xff]  ;;  %v3892_v21 = vld [vmem:[#allocation24_spill] sm:$0xff]  ;;  %v3893_v32 = vld [vmem:[#allocation25_spill] sm:$0xff] }
  0x93   : > { %v724_v36 = vadd.f32 %v719_v28, %v714_v63  ;;  %v725_v41 = vadd.f32 %v720_v33, %v715_v53  ;;  %v726_v22 = vadd.f32 %v721_v42, %v716_v40  ;;  %v905_v56 = vmul.f32 %v3024_v0, %v2836_v24 }
  0x94   : > { %v906_v39 = vmul.f32 %v3026_v43, %v3887_v57  ;;  %v705_v46 = vadd.f32 %v704_v8, %v703_v52  ;;  %v727_v14 = vrot.slane %v722_v35, 4  ;;  %v733_v58 = vrot.slane %v723_v12, 4 }
  0x95   : > { %v739_v59 = vrot.slane %v724_v36, 4  ;;  %v745_v48 = vrot.slane %v725_v41, 4  ;;  %v751_v50 = vrot.slane %v726_v22, 4  ;;  %v3086_v45 = vmul.f32 %v3028_v44, %v3888_v27 }
  0x96   : > { %v908_v61 = vmul.f32 %v3889_v54, %v3030_v34  ;;  %v707_v62 = vadd.f32 %v706_v30, %v705_v46  ;;  %v728_v26 = vadd.f32 %v727_v14, %v722_v35  ;;  %v734_v49 = vadd.f32 %v733_v58, %v723_v12 }
  0x97   : > { %v740_v17 = vadd.f32 %v739_v59, %v724_v36  ;;  %v746_v51 = vadd.f32 %v745_v48, %v725_v41  ;;  %v752_v29 = vadd.f32 %v751_v50, %v726_v22  ;;  %v909_v2 = vmul.f32 %v3890_v37, %v3032_v1 }
  0x98   : > { %v910_v8 = vmul.f32 %v3891_v9, %v3036_v60  ;;  %v709_v3 = vadd.f32 %v708_v4, %v707_v62  ;;  %v729_v11 = vrot.slane %v728_v26, 2  ;;  %v735_v20 = vrot.slane %v734_v49, 2 }
  0x99   : > { %v741_v63 = vrot.slane %v740_v17, 2  ;;  %v747_v53 = vrot.slane %v746_v51, 2  ;;  %v753_v40 = vrot.slane %v752_v29, 2  ;;  %v911_v30 = vmul.f32 %v3892_v21, %v3038_v16 }
  0x9a   : > { %v912_v15 = vmul.f32 %v3893_v32, %v3044_v31  ;;  %v711_v28 = vadd.f32 %v710_v19, %v709_v3  ;;  %v730_v33 = vadd.f32 %v729_v11, %v728_v26  ;;  %v736_v42 = vadd.f32 %v735_v20, %v734_v49 }
  0x9b   : > { %v742_v52 = vadd.f32 %v741_v63, %v740_v17  ;;  %v748_v35 = vadd.f32 %v747_v53, %v746_v51  ;;  %v754_v12 = vadd.f32 %v753_v40, %v752_v29  ;;  %v913_v36 = vsub.f32 %v903_v55, %v908_v61  ;;  %v3894_v29 = vld [vmem:[#allocation16_spill] sm:$0xff] }
  0x9c   : > { %v914_v41 = vsub.f32 %v904_v25, %v909_v2  ;;  %v731_v4 = vrot.slane %v730_v33, 1  ;;  %v737_v22 = vrot.slane %v736_v42, 1  ;;  %v3098_v14 = vmul.f32 0.0007071068, %v711_v28 }
  0x9d   : > { %v743_v46 = vrot.slane %v742_v52, 1  ;;  %v749_v58 = vrot.slane %v748_v35, 1  ;;  %v755_v59 = vrot.slane %v754_v12, 1  ;;  %v915_v48 = vsub.f32 %v905_v56, %v910_v8  ;;  %v3895_v8 = vld [vmem:[#allocation17_spill] sm:$0xff] }
  0x9e   : > { %v916_v50 = vsub.f32 %v906_v39, %v911_v30  ;;  %v732_v62 = vadd.f32 %v731_v4, %v730_v33  ;;  %v738_v44 = vadd.f32 %v737_v22, %v736_v42  ;;  %v767_v19 = vrot.slane %v3098_v14, %v2795_v5 }
  0x9f   : > { %v744_v32 = vadd.f32 %v743_v46, %v742_v52  ;;  %v750_v26 = vadd.f32 %v749_v58, %v748_v35  ;;  %v756_v49 = vadd.f32 %v755_v59, %v754_v12  ;;  %v771_v55 = vrot.slane %v3098_v14, %v2797_v6 }
  0xa0   : > { %v775_v25 = vrot.slane %v3098_v14, %v2799_v7  ;;  %v757_v61 = vmul.f32 0.125, %v732_v62  ;;  %v758_v17 = vmul.f32 0.125, %v738_v44  ;;  %v779_v56 = vrot.slane %v3098_v14, %v3894_v29 }
  0xa1   : > { %v759_v51 = vmul.f32 0.125, %v744_v32  ;;  %v760_v39 = vmul.f32 0.125, %v750_v26  ;;  %v761_v2 = vmul.f32 0.125, %v756_v49  ;;  %v783_v3 = vrot.slane %v3098_v14, %v3895_v8 }
  0xa2   : > { %v799_v11 = vmul.f32 %v3098_v14, %v3098_v14  ;;  %v3112_v20 = vadd.f32 %v767_v19, %v757_v61  ;;  %v3114_v63 = vadd.f32 %v771_v55, %v758_v17  ;;  %v856_v44 = vsub.f32 0.0, %v3098_v14 }
  0xa3   : > { %v3116_v53 = vadd.f32 %v775_v25, %v759_v51  ;;  %v3119_v40 = vadd.f32 %v779_v56, %v760_v39  ;;  %v3121_v30 = vadd.f32 %v783_v3, %v761_v2  ;;  %v917_v19 = vsub.f32 %v3086_v45, %v912_v15 }
  0xa4   : > { %v804_v32 = vrot.slane %v799_v11, %v2795_v5  ;;  %v808_v28 = vrot.slane %v799_v11, %v2797_v6  ;;  %v794_v33 = vmul.f32 %v3112_v20, %v3112_v20  ;;  %v795_v42 = vmul.f32 %v3114_v63, %v3114_v63 }
  0xa5   : > { %v796_v52 = vmul.f32 %v3116_v53, %v3116_v53  ;;  %v812_v35 = vrot.slane %v799_v11, %v2799_v7  ;;  %v797_v12 = vmul.f32 %v3119_v40, %v3119_v40  ;;  %v798_v4 = vmul.f32 %v3121_v30, %v3121_v30 }
  0xa6   : > { %v816_v22 = vrot.slane %v799_v11, %v3894_v29  ;;  %v820_v46 = vrot.slane %v799_v11, %v3895_v8  ;;  %v3138_v58 = vadd.f32 %v804_v32, %v794_v33  ;;  %v3140_v59 = vadd.f32 %v808_v28, %v795_v42 }
  0xa7   : > { %v3142_v62 = vadd.f32 %v812_v35, %v796_v52  ;;  %v918_v55 = vrot.slane %v913_v36, 4  ;;  %v924_v25 = vrot.slane %v914_v41, 4  ;;  %v930_v61 = vrot.slane %v915_v48, 4 }
  0xa8   : > { %v3145_v26 = vadd.f32 %v816_v22, %v797_v12  ;;  %v3147_v49 = vadd.f32 %v820_v46, %v798_v4  ;;  %2400 = vrcp.f32 %v3138_v58  ;;  %v936_v17 = vrot.slane %v916_v50, 4 }
  0xa9   : > { %v942_v51 = vrot.slane %v917_v19, 4  ;;  %2402 = vrcp.f32 %v3140_v59  ;;  %v919_v56 = vadd.f32 %v918_v55, %v913_v36  ;;  %v925_v39 = vadd.f32 %v924_v25, %v914_v41 }
  0xaa   : > { %v953_v2 = vsub.f32 %v2805_v10, %v2811_v13  ;;  %2404 = vrcp.f32 %v3142_v62  ;;  %v931_v45 = vadd.f32 %v930_v61, %v915_v48  ;;  %v937_v15 = vadd.f32 %v936_v17, %v916_v50 }
  0xab   : > { %v943_v3 = vadd.f32 %v942_v51, %v917_v19  ;;  %2406 = vrcp.f32 %v3145_v26  ;;  %v920_v11 = vrot.slane %v919_v56, 2  ;;  %v926_v32 = vrot.slane %v925_v39, 2 }
  0xac   : > { %v954_v28 = vmul.f32 0.0007071068, %v953_v2  ;;  %2408 = vrcp.f32 %v3147_v49  ;;  %v932_v33 = vrot.slane %v931_v45, 2  ;;  %v938_v42 = vrot.slane %v937_v15, 2 }
  0xad   : > { %v944_v52 = vrot.slane %v943_v3, 2  ;;  %v921_v36 = vadd.f32 %v920_v11, %v919_v56  ;;  %v927_v41 = vadd.f32 %v926_v32, %v925_v39  ;;  %v986_v56 = vmul.f32 %v3030_v34, %v2822_v18 }
  0xae   : > { %v959_v35 = vrot.slane %v954_v28, %v2795_v5  ;;  %v963_v12 = vrot.slane %v954_v28, %v2797_v6  ;;  %v933_v4 = vadd.f32 %v932_v33, %v931_v45  ;;  %v939_v48 = vadd.f32 %v938_v42, %v937_v15 }
  0xaf   : > { %v945_v50 = vadd.f32 %v944_v52, %v943_v3  ;;  %v967_v22 = vrot.slane %v954_v28, %v2799_v7  ;;  %v922_v46 = vrot.slane %v921_v36, 1  ;;  %v928_v19 = vrot.slane %v927_v41, 1 }
  0xb0   : > { %v971_v55 = vrot.slane %v954_v28, %v3894_v29  ;;  %v975_v25 = vrot.slane %v954_v28, %v3895_v8  ;;  %v934_v61 = vrot.slane %v933_v4, 1  ;;  %v940_v17 = vrot.slane %v939_v48, 1 }
  0xb1   : > { %v946_v51 = vrot.slane %v945_v50, 1  ;;  %v923_v39 = vadd.f32 %v922_v46, %v921_v36  ;;  %v929_v2 = vadd.f32 %v928_v19, %v927_v41  ;;  %v987_v45 = vmul.f32 %v3032_v1, %v2833_v23 }
  0xb2   : > { %v988_v15 = vmul.f32 %v3036_v60, %v2836_v24  ;;  %v935_v3 = vadd.f32 %v934_v61, %v933_v4  ;;  %v941_v11 = vadd.f32 %v940_v17, %v939_v48  ;;  %v989_v28 = vmul.f32 %v3038_v16, %v3887_v57 }
  0xb3   : > { %v947_v32 = vadd.f32 %v946_v51, %v945_v50  ;;  %v948_v33 = vmul.f32 0.125, %v923_v39  ;;  %v949_v42 = vmul.f32 0.125, %v929_v2  ;;  %v990_v52 = vmul.f32 %v3044_v31, %v3888_v27  ;;  %v3897_v51 = vld [vmem:[#allocation25_spill] sm:$0xff] }
  0xb4   : > { %v991_v18 = vmul.f32 %v3889_v54, %v3020_v47  ;;  %v950_v36 = vmul.f32 0.125, %v935_v3  ;;  %v951_v41 = vmul.f32 0.125, %v941_v11  ;;  %v992_v24 = vmul.f32 %v3890_v37, %v3022_v38 }
  0xb5   : > { %v952_v23 = vmul.f32 0.125, %v947_v32  ;;  %v2401_v4 = vpop.eup %2400  ;;  %v3175_v48 = vadd.f32 %v959_v35, %v948_v33  ;;  %v3177_v50 = vadd.f32 %v963_v12, %v949_v42  ;;  %v993_v57 = vmul.f32 %v3891_v9, %v3024_v0  ;;  %v3896_v12 = vld [vmem:[#allocation28_spill] sm:$0xff] }
  0xb6   : > { %v994_v27 = vmul.f32 %v3892_v21, %v3026_v43  ;;  %v2403_v46 = vpop.eup %2402  ;;  %v836_v54 = vmul.f32 %v2401_v4, %v3138_v58  ;;  %v3184_v19 = vadd.f32 %v967_v22, %v950_v36  ;;  %v3186_v61 = vadd.f32 %v971_v55, %v951_v41 }
  0xb7   : > { %v3188_v17 = vadd.f32 %v975_v25, %v952_v23  ;;  %v2405_v37 = vpop.eup %2404  ;;  %v837_v35 = vmul.f32 %v2403_v46, %v3140_v59  ;;  %v995_v39 = vmul.f32 %v3897_v51, %v3896_v12  ;;  %v996_v2 = vadd.f32 %v991_v18, %v986_v56 }
  0xb8   : > { %v997_v9 = vadd.f32 %v992_v24, %v987_v45  ;;  %v2407_v3 = vpop.eup %2406  ;;  %v838_v21 = vmul.f32 %v2405_v37, %v3142_v62  ;;  %v841_v11 = vsub.f32 2.0, %v836_v54  ;;  %v998_v32 = vadd.f32 %v993_v57, %v988_v15 }
  0xb9   : > { %v999_v58 = vadd.f32 %v994_v27, %v989_v28  ;;  %v2409_v22 = vpop.eup %2408  ;;  %v839_v55 = vmul.f32 %v2407_v3, %v3145_v26  ;;  %v842_v33 = vsub.f32 2.0, %v837_v35  ;;  %v1000_v25 = vadd.f32 %v995_v39, %v990_v52  ;;  %v3898_v39 = vld [vmem:[#allocation18_spill] sm:$0xff] }
  0xba   : > { %v1001_v42 = vrot.slane %v996_v2, 4  ;;  %v840_v36 = vmul.f32 %v2409_v22, %v3147_v49  ;;  %v843_v59 = vsub.f32 2.0, %v838_v21  ;;  %v846_v41 = vmul.f32 %v2401_v4, %v841_v11 }
  0xbb   : > { %v1007_v23 = vrot.slane %v997_v9, 4  ;;  %v844_v51 = vsub.f32 2.0, %v839_v55  ;;  %v847_v56 = vmul.f32 %v2403_v46, %v842_v33  ;;  %v1013_v18 = vrot.slane %v998_v32, 4 }
  0xbc   : > { %v1002_v45 = vadd.f32 %v1001_v42, %v996_v2  ;;  %v845_v24 = vsub.f32 2.0, %v840_v36  ;;  %v848_v62 = vmul.f32 %v2405_v37, %v843_v59  ;;  %v3197_v15 = vmul.f32 %v846_v41, %v3112_v20 }
  0xbd   : > { %v1008_v28 = vadd.f32 %v1007_v23, %v997_v9  ;;  %v849_v57 = vmul.f32 %v2407_v3, %v844_v51  ;;  %v3200_v26 = vmul.f32 %v847_v56, %v3114_v63  ;;  %v862_v52 = vcombine.low %v846_v41, %v847_v56 }
  0xbe   : > { %v1003_v27 = vrot.slane %v1002_v45, 2  ;;  %v850_v49 = vmul.f32 %v2409_v22, %v845_v24  ;;  %v3203_v4 = vmul.f32 %v848_v62, %v3116_v53  ;;  %v1014_v46 = vadd.f32 %v1013_v18, %v998_v32 }
  0xbf   : > { %v1009_v54 = vrot.slane %v1008_v28, 2  ;;  %v3206_v35 = vmul.f32 %v849_v57, %v3119_v40  ;;  %v863_v37 = vcombine.low %v848_v62, %v849_v57  ;;  %v870_v20 = vrot.slane %v862_v52, %v3898_v39 }
  0xc0   : > { %v1004_v2 = vadd.f32 %v1003_v27, %v1002_v45  ;;  %v3210_v9 = vmul.f32 %v850_v49, %v3121_v30  ;;  %v884_v63 = vrot.slane %v850_v49, %v3898_v39  ;;  %v1015_v21 = vrot.slane %v1014_v46, 2 }
  0xc1   : > { %v1010_v3 = vadd.f32 %v1009_v54, %v1008_v28  ;;  %v877_v11 = vrot.slane %v863_v37, %v3898_v39  ;;  %v1019_v22 = vrot.slane %v999_v58, 4  ;;  %v1025_v55 = vrot.slane %v1000_v25, 4 }
  0xc2   : > { %v1005_v53 = vrot.slane %v1004_v2, 1  ;;  %v899_v32 = vrot.slane %v884_v63, %v3898_v39  ;;  %v1016_v33 = vadd.f32 %v1015_v21, %v1014_v46  ;;  %v1036_v42 = vadd.f32 %v2811_v13, %v2805_v10 }
  0xc3   : > { %v1011_v40 = vrot.slane %v1010_v3, 1  ;;  %v885_v36 = vcombine.low %v870_v20, %v877_v11  ;;  %v1020_v30 = vadd.f32 %v1019_v22, %v999_v58  ;;  %v1026_v41 = vadd.f32 %v1025_v55, %v1000_v25 }
  0xc4   : > { %v1006_v59 = vadd.f32 %v1005_v53, %v1004_v2  ;;  %v1017_v51 = vrot.slane %v1016_v33, 1  ;;  %v1037_v56 = vmul.f32 0.0007071068, %v1036_v42  ;;  %v1069_v45 = vmul.f32 %v3175_v48, %v3197_v15 }
  0xc5   : > { %v1012_v23 = vadd.f32 %v1011_v40, %v1010_v3  ;;  %v892_v18 = vrot.slane %v885_v36, %v3898_v39  ;;  %v1021_v24 = vrot.slane %v1020_v30, 2  ;;  %v1027_v62 = vrot.slane %v1026_v41, 2 }
  0xc6   : > { %v1031_v28 = vmul.f32 0.125, %v1006_v59  ;;  %v1018_v57 = vadd.f32 %v1017_v51, %v1016_v33  ;;  %v1042_v27 = vrot.slane %v1037_v56, %v2795_v5  ;;  %v1046_v10 = vrot.slane %v1037_v56, %v2797_v6 }
  0xc7   : > { %v1032_v52 = vmul.f32 0.125, %v1012_v23  ;;  %v900_v13 = vcombine.low %v892_v18, %v899_v32  ;;  %v1022_v58 = vadd.f32 %v1021_v24, %v1020_v30  ;;  %v1028_v25 = vadd.f32 %v1027_v62, %v1026_v41 }
  0xc8   : > { %v1050_v49 = vrot.slane %v1037_v56, %v2799_v7  ;;  %v1033_v54 = vmul.f32 0.125, %v1018_v57  ;;  %v1054_v46 = vrot.slane %v1037_v56, %v3894_v29  ;;  %v1058_v37 = vrot.slane %v1037_v56, %v3895_v8 }
  0xc9   : > { %v1064_v39 = vadd.f32 %v1042_v27, %v1031_v28  ;;  %v902_v20 = vmul.f32 %v900_v13, %v856_v44  ;;  %v1023_v2 = vrot.slane %v1022_v58, 1  ;;  %v1029_v63 = vrot.slane %v1028_v25, 1 }
  0xca   : > { %v1065_v3 = vadd.f32 %v1046_v10, %v1032_v52  ;;  %v1066_v21 = vadd.f32 %v1050_v49, %v1033_v54  ;;  %v1070_v11 = vmul.f32 %v3177_v50, %v3200_v26  ;;  %v1071_v53 = vmul.f32 %v3184_v19, %v3203_v4 }
  0xcb   : > { %v1072_v22 = vmul.f32 %v3186_v61, %v3206_v35  ;;  %v1024_v55 = vadd.f32 %v1023_v2, %v1022_v58  ;;  %v1030_v32 = vadd.f32 %v1029_v63, %v1028_v25  ;;  %v1073_v40 = vmul.f32 %v3188_v17, %v3210_v9  ;;  %v1126_v2 = vld [vmem:[%s2778_s11 + $0x8] sm:$0xff]  ;;  %v1127_v63 = vld [vmem:[%s2778_s11 + $0x10] sm:$0xff] }
  0xcc   : > { %v3236_v14 = vrot.slane %v902_v20, %v2795_v5  ;;  %v3239_v44 = vrot.slane %v902_v20, %v2797_v6  ;;  %v3242_v33 = vrot.slane %v902_v20, %v2799_v7  ;;  %v3245_v42 = vrot.slane %v902_v20, %v3894_v29 }
  0xcd   : > { %v3248_v36 = vrot.slane %v902_v20, %v3895_v8  ;;  %v1034_v59 = vmul.f32 0.125, %v1024_v55  ;;  %v1035_v30 = vmul.f32 0.125, %v1030_v32  ;;  %v1115_v13 = vmul.f32 %v1064_v39, %v3197_v15 }
  0xce   : > { %3899 = vst [vmem:[#allocation19_spill] sm:$0xff] %v3245_v42  ;;  %v1100_v41 = vmul.f32 %v3236_v14, %v1064_v39  ;;  %v1110_v23 = vmul.f32 %v3236_v14, %v3175_v48  ;;  %v1101_v51 = vmul.f32 %v3239_v44, %v1065_v3  ;;  %v1102_v56 = vmul.f32 %v3242_v33, %v1066_v21 }
  0xcf   : > { %3900 = vst [vmem:[#allocation20_spill] sm:$0xff] %v3248_v36  ;;  %v1111_v18 = vmul.f32 %v3239_v44, %v3177_v50  ;;  %v1112_v24 = vmul.f32 %v3242_v33, %v3184_v19  ;;  %v1067_v62 = vadd.f32 %v1054_v46, %v1034_v59  ;;  %v1068_v28 = vadd.f32 %v1058_v37, %v1035_v30  ;;  %v2265_v59 = vld [vmem:[%s2778_s11 + $0xa0] sm:$0xff]  ;;  %v2266_v30 = vld [vmem:[%s2778_s11 + $0xa8] sm:$0xff] }
  0xd0   : > { %v1105_v57 = vsub.f32 %v1069_v45, %v1100_v41  ;;  %v1113_v52 = vmul.f32 %v3245_v42, %v3186_v61  ;;  %v1106_v27 = vsub.f32 %v1070_v11, %v1101_v51  ;;  %v1107_v10 = vsub.f32 %v1071_v53, %v1102_v56  ;;  %v1128_v11 = vld [vmem:[%s2778_s11 + $0x18] sm:$0xff]  ;;  %v1129_v53 = vld [vmem:[%s2778_s11 + $0x20] sm:$0xff]  ;;  %v2267_v41 = vld [vmem:[%s2778_s11 + $0xb0] sm:$0xff] }
  0xd1   : > { %v1114_v48 = vmul.f32 %v3248_v36, %v3188_v17  ;;  %v1103_v50 = vmul.f32 %v3245_v42, %v1067_v62  ;;  %v1104_v19 = vmul.f32 %v3248_v36, %v1068_v28  ;;  %v1116_v58 = vmul.f32 %v1065_v3, %v3200_v26  ;;  %v1125_v17 = vld [vmem:[%s2778_s11] sm:$0xff]  ;;  %v2268_v56 = vld [vmem:[%s2778_s11 + $0xb8] sm:$0xff] }
  0xd2   : > { %v1117_v45 = vmul.f32 %v1066_v21, %v3203_v4  ;;  %v1118_v61 = vmul.f32 %v1067_v62, %v3206_v35  ;;  %v1119_v25 = vmul.f32 %v1068_v28, %v3210_v9  ;;  %v1120_v49 = vadd.f32 %v1115_v13, %v1110_v23 }
  0xd3   : > { %v1139_v54 = vrot.slane %v1105_v57, %v2795_v5  ;;  %v1108_v46 = vsub.f32 %v1072_v22, %v1103_v50  ;;  %v1109_v37 = vsub.f32 %v1073_v40, %v1104_v19  ;;  %v1121_v39 = vadd.f32 %v1116_v58, %v1111_v18  ;;  %v2269_v18 = vld [vmem:[%s2778_s11 + $0xc0] sm:$0xff] }
  0xd4   : > { %v1122_v20 = vadd.f32 %v1117_v45, %v1112_v24  ;;  %v1123_v3 = vadd.f32 %v1118_v61, %v1113_v52  ;;  %v1124_v21 = vadd.f32 %v1119_v25, %v1114_v48  ;;  %v1143_v55 = vrot.slane %v1106_v27, %v2795_v5 }
  0xd5   : > { %v1147_v32 = vrot.slane %v1107_v10, %v2795_v5  ;;  %v1151_v22 = vrot.slane %v1108_v46, %v2795_v5  ;;  %v1155_v40 = vrot.slane %v1109_v37, %v2795_v5  ;;  %v1156_v23 = vmul.f32 %v1139_v54, %v1125_v17 }
  0xd6   : > { %v1164_v51 = vrot.slane %v1120_v49, %v2795_v5  ;;  %v1157_v24 = vmul.f32 %v1143_v55, %v1126_v2  ;;  %v1168_v28 = vrot.slane %v1121_v39, %v2795_v5  ;;  %v1172_v57 = vrot.slane %v1122_v20, %v2795_v5 }
  0xd7   : > { %v1158_v62 = vmul.f32 %v1147_v32, %v1127_v63  ;;  %v1159_v52 = vmul.f32 %v1151_v22, %v1128_v11  ;;  %v1160_v27 = vmul.f32 %v1155_v40, %v1129_v53  ;;  %v1176_v10 = vrot.slane %v1123_v3, %v2795_v5 }
  0xd8   : > { %v1180_v48 = vrot.slane %v1124_v21, %v2795_v5  ;;  %v1181_v13 = vmul.f32 %v2265_v59, %v1164_v51  ;;  %v1182_v50 = vmul.f32 %v2266_v30, %v1168_v28  ;;  %v1183_v19 = vmul.f32 %v2267_v41, %v1172_v57 }
  0xd9   : > { %v3290_v58 = vmul.f32 %v2265_v59, %v1139_v54  ;;  %v1184_v45 = vmul.f32 %v2268_v56, %v1176_v10  ;;  %v3292_v25 = vmul.f32 %v2266_v30, %v1143_v55  ;;  %v3294_v49 = vmul.f32 %v2267_v41, %v1147_v32 }
  0xda   : > { %v1185_v61 = vmul.f32 %v2269_v18, %v1180_v48  ;;  %v3296_v46 = vadd.f32 %v1181_v13, %v1156_v23  ;;  %v3298_v37 = vadd.f32 %v1182_v50, %v1157_v24  ;;  %v3300_v39 = vadd.f32 %v1183_v19, %v1158_v62  ;;  %v2410_v23 = vld [vmem:[%s2785_s26 + $0x28] sm:$0xff]  ;;  %v2413_v24 = vld [vmem:[%s2785_s26 + $0x40] sm:$0xff]  ;;  %v2417_v13 = vld [vmem:[%s2785_s26 + $0xd8] sm:$0xff] }
  0xdb   : > { %3901 = vst [vmem:[#allocation21_spill] sm:$0xff] %v3290_v58  ;;  %3902 = vst [vmem:[#allocation22_spill] sm:$0xff] %v3292_v25  ;;  %v3302_v20 = vmul.f32 %v2268_v56, %v1151_v22  ;;  %v3304_v3 = vadd.f32 %v1184_v45, %v1159_v52  ;;  %v3308_v21 = vmul.f32 %v2269_v18, %v1155_v40  ;;  %v2415_v52 = vld [vmem:[%s2785_s26 + $0xc8] sm:$0xff]  ;;  %v2418_v19 = vld [vmem:[%s2785_s26 + $0xe0] sm:$0xff] }
  0xdc   : > { %3903 = vst [vmem:[#allocation23_spill] sm:$0xff] %v3294_v49  ;;  %3904 = vst [vmem:[#allocation24_spill] sm:$0xff] %v3298_v37  ;;  %v3306_v54 = vadd.f32 %v1185_v61, %v1160_v27  ;;  %v3310_v55 = vmul.f32 %v1164_v51, %v1125_v17  ;;  %v3312_v32 = vmul.f32 %v1168_v28, %v1126_v2  ;;  %v2411_v17 = vld [vmem:[%s2785_s26 + $0x30] sm:$0xff]  ;;  %v2412_v51 = vld [vmem:[%s2785_s26 + $0x38] sm:$0xff] }
  0xdd   : > { %3905 = vst [vmem:[#allocation16_spill] sm:$0xff] %v3300_v39  ;;  %3906 = vst [vmem:[#allocation17_spill] sm:$0xff] %v3302_v20  ;;  %v3314_v59 = vmul.f32 %v1172_v57, %v1127_v63  ;;  %v3316_v30 = vmul.f32 %v1176_v10, %v1128_v11  ;;  %v3318_v41 = vmul.f32 %v1180_v48, %v1129_v53  ;;  %v2414_v28 = vld [vmem:[%s2785_s26 + $0x48] sm:$0xff]  ;;  %v2416_v10 = vld [vmem:[%s2785_s26 + $0xd0] sm:$0xff] }
  0xde   : > { %3907 = vst [vmem:[#allocation25_spill] sm:$0xff] %v3304_v3  ;;  %3908 = vst [vmem:[#allocation18_spill] sm:$0xff] %v3306_v54  ;;  %v1206_v40 = vmul.f32 %v2410_v23, %v3020_v47  ;;  %v1207_v2 = vmul.f32 %v2411_v17, %v3022_v38  ;;  %v1208_v63 = vmul.f32 %v2412_v51, %v3024_v0  ;;  %v2419_v61 = vld [vmem:[%s2785_s26 + $0xe8] sm:$0xff]  ;;  %v3352_v53 = vld [vmem:[#allocation7 + $0x19] sm:$0x1f] }
  0xdf   : > { %3909 = vst [vmem:[#allocation34_spill] sm:$0xff] %v3308_v21  ;;  %3910 = vst [vmem:[#allocation35_spill] sm:$0xff] %v3310_v55  ;;  %v1209_v62 = vmul.f32 %v2413_v24, %v3026_v43  ;;  %v1210_v57 = vmul.f32 %v2414_v28, %v3896_v12  ;;  %v1211_v27 = vmul.f32 %v2415_v52, %v3030_v34  ;;  %v3350_v56 = vld [vmem:[#allocation7 + $0x5] sm:$0x1f] }
  0xe0   : > { %3911 = vst [vmem:[#allocation36_spill] sm:$0xff] %v3312_v32  ;;  %3912 = vst [vmem:[#allocation37_spill] sm:$0xff] %v3314_v59  ;;  %v1212_v48 = vmul.f32 %v2416_v10, %v3032_v1  ;;  %v1213_v50 = vmul.f32 %v2417_v13, %v3036_v60  ;;  %v1214_v45 = vmul.f32 %v2418_v19, %v3038_v16 }
  0xe1   : > { %3913 = vst [vmem:[#allocation38_spill] sm:$0xff] %v3316_v30  ;;  %3914 = vst [vmem:[#allocation39_spill] sm:$0xff] %v3318_v41  ;;  %v1215_v18 = vmul.f32 %v2419_v61, %v3044_v31  ;;  %v1256_v11 = vsub.f32 %v3350_v56, %v3352_v53  ;;  %v1216_v22 = vsub.f32 %v1206_v40, %v1211_v27 }
  0xe2   : > { %v1217_v41 = vsub.f32 %v1207_v2, %v1212_v48  ;;  %v1289_v21 = vmul.f32 %v2410_v23, %v3030_v34  ;;  %v1290_v30 = vmul.f32 %v2411_v17, %v3032_v1  ;;  %v1218_v20 = vsub.f32 %v1208_v63, %v1213_v50 }
  0xe3   : > { %v1219_v59 = vsub.f32 %v1209_v62, %v1214_v45  ;;  %v1220_v49 = vsub.f32 %v1210_v57, %v1215_v18  ;;  %v3358_v32 = vmul.f32 0.0007071068, %v1256_v11  ;;  %v1221_v25 = vrot.slane %v1216_v22, 4 }
  0xe4   : > { %v1227_v55 = vrot.slane %v1217_v41, 4  ;;  %v1291_v58 = vmul.f32 %v2412_v51, %v3036_v60  ;;  %v1292_v54 = vmul.f32 %v2413_v24, %v3038_v16  ;;  %v1233_v3 = vrot.slane %v1218_v20, 4 }
  0xe5   : > { %v1239_v39 = vrot.slane %v1219_v59, 4  ;;  %v1245_v37 = vrot.slane %v1220_v49, 4  ;;  %v1262_v40 = vrot.slane %v3358_v32, %v2795_v5  ;;  %v1222_v23 = vadd.f32 %v1221_v25, %v1216_v22 }
  0xe6   : > { %v1228_v2 = vadd.f32 %v1227_v55, %v1217_v41  ;;  %v1266_v17 = vrot.slane %v3358_v32, %v2797_v6  ;;  %v1270_v63 = vrot.slane %v3358_v32, %v2799_v7  ;;  %v1234_v11 = vadd.f32 %v1233_v3, %v1218_v20 }
  0xe7   : > { %v1240_v18 = vadd.f32 %v1239_v39, %v1219_v59  ;;  %v1246_v62 = vadd.f32 %v1245_v37, %v1220_v49  ;;  %v1274_v51 = vrot.slane %v3358_v32, %v3894_v29  ;;  %v1223_v24 = vrot.slane %v1222_v23, 2 }
  0xe8   : > { %v1229_v57 = vrot.slane %v1228_v2, 2  ;;  %v1278_v27 = vrot.slane %v3358_v32, %v3895_v8  ;;  %v1293_v25 = vmul.f32 %v2414_v28, %v3044_v31  ;;  %v1235_v55 = vrot.slane %v1234_v11, 2 }
  0xe9   : > { %v1241_v41 = vrot.slane %v1240_v18, 2  ;;  %v1247_v22 = vrot.slane %v1246_v62, 2  ;;  %v1294_v48 = vmul.f32 %v2415_v52, %v3020_v47  ;;  %v1224_v50 = vadd.f32 %v1223_v24, %v1222_v23 }
  0xea   : > { %v1230_v45 = vadd.f32 %v1229_v57, %v1228_v2  ;;  %v1295_v39 = vmul.f32 %v2416_v10, %v3022_v38  ;;  %v1296_v49 = vmul.f32 %v2417_v13, %v3024_v0  ;;  %v1236_v37 = vadd.f32 %v1235_v55, %v1234_v11 }
  0xeb   : > { %v1242_v20 = vadd.f32 %v1241_v41, %v1240_v18  ;;  %v1248_v3 = vadd.f32 %v1247_v22, %v1246_v62  ;;  %v1297_v59 = vmul.f32 %v2418_v19, %v3026_v43  ;;  %v1225_v16 = vrot.slane %v1224_v50, 1 }
  0xec   : > { %v1231_v32 = vrot.slane %v1230_v45, 1  ;;  %v1298_v28 = vmul.f32 %v2419_v61, %v3896_v12  ;;  %v1299_v31 = vadd.f32 %v1294_v48, %v1289_v21  ;;  %v1237_v60 = vrot.slane %v1236_v37, 1 }
  0xed   : > { %v1243_v1 = vrot.slane %v1242_v20, 1  ;;  %v1249_v34 = vrot.slane %v1248_v3, 1  ;;  %v1300_v52 = vadd.f32 %v1295_v39, %v1290_v30  ;;  %v1226_v23 = vadd.f32 %v1225_v16, %v1224_v50 }
  0xee   : > { %v1232_v2 = vadd.f32 %v1231_v32, %v1230_v45  ;;  %v1301_v24 = vadd.f32 %v1296_v49, %v1291_v58  ;;  %v1302_v10 = vadd.f32 %v1297_v59, %v1292_v54  ;;  %v1238_v57 = vadd.f32 %v1237_v60, %v1236_v37 }
  0xef   : > { %v1244_v13 = vadd.f32 %v1243_v1, %v1242_v20  ;;  %v1250_v11 = vadd.f32 %v1249_v34, %v1248_v3  ;;  %v1303_v18 = vadd.f32 %v1298_v28, %v1293_v25  ;;  %v1251_v62 = vmul.f32 0.125, %v1226_v23 }
  0xf0   : > { %v1252_v55 = vmul.f32 0.125, %v1232_v2  ;;  %v1304_v19 = vrot.slane %v1299_v31, 4  ;;  %v1310_v41 = vrot.slane %v1300_v52, 4  ;;  %v1253_v22 = vmul.f32 0.125, %v1238_v57 }
  0xf1   : > { %v1254_v43 = vmul.f32 0.125, %v1244_v13  ;;  %v1255_v61 = vmul.f32 0.125, %v1250_v11  ;;  %v1316_v21 = vrot.slane %v1301_v24, 4  ;;  %v1284_v48 = vadd.f32 %v1262_v40, %v1251_v62 }
  0xf2   : > { %v1285_v12 = vadd.f32 %v1266_v17, %v1252_v55  ;;  %v1305_v0 = vadd.f32 %v1304_v19, %v1299_v31  ;;  %v1311_v30 = vadd.f32 %v1310_v41, %v1300_v52  ;;  %v1286_v16 = vadd.f32 %v1270_v63, %v1253_v22 }
  0xf3   : > { %v1287_v50 = vadd.f32 %v1274_v51, %v1254_v43  ;;  %v1288_v58 = vadd.f32 %v1278_v27, %v1255_v61  ;;  %v1317_v54 = vadd.f32 %v1316_v21, %v1301_v24  ;;  %v1322_v34 = vrot.slane %v1302_v10, 4 }
  0xf4   : > { %v1306_v60 = vrot.slane %v1305_v0, 2  ;;  %v1312_v1 = vrot.slane %v1311_v30, 2  ;;  %v1328_v25 = vrot.slane %v1303_v18, 4  ;;  %v1339_v39 = vadd.f32 %v3352_v53, %v3350_v56 }
  0xf5   : > { %v1318_v45 = vrot.slane %v1317_v54, 2  ;;  %v3381_v49 = vmul.f32 %v1284_v48, %v3197_v15  ;;  %v3384_v40 = vmul.f32 %v1285_v12, %v3200_v26  ;;  %v1323_v63 = vadd.f32 %v1322_v34, %v1302_v10 }
  0xf6   : > { %v1307_v31 = vadd.f32 %v1306_v60, %v1305_v0  ;;  %v1313_v17 = vadd.f32 %v1312_v1, %v1311_v30  ;;  %v1329_v43 = vadd.f32 %v1328_v25, %v1303_v18  ;;  %v1340_v27 = vmul.f32 0.0007071068, %v1339_v39 }
  0xf7   : > { %v1319_v51 = vadd.f32 %v1318_v45, %v1317_v54  ;;  %v1374_v37 = vmul.f32 %v1286_v16, %v3203_v4  ;;  %v3388_v20 = vmul.f32 %v1287_v50, %v3206_v35  ;;  %v1324_v53 = vrot.slane %v1323_v63, 2 }
  0xf8   : > { %v1308_v3 = vrot.slane %v1307_v31, 1  ;;  %v1314_v59 = vrot.slane %v1313_v17, 1  ;;  %v1330_v56 = vrot.slane %v1329_v43, 2  ;;  %v1345_v28 = vrot.slane %v1340_v27, %v2795_v5 }
  0xf9   : > { %v1320_v32 = vrot.slane %v1319_v51, 1  ;;  %v1349_v52 = vrot.slane %v1340_v27, %v2797_v6  ;;  %v1353_v0 = vrot.slane %v1340_v27, %v2799_v7  ;;  %v1325_v24 = vadd.f32 %v1324_v53, %v1323_v63 }
  0xfa   : > { %v1309_v23 = vadd.f32 %v1308_v3, %v1307_v31  ;;  %v1315_v2 = vadd.f32 %v1314_v59, %v1313_v17  ;;  %v1331_v10 = vadd.f32 %v1330_v56, %v1329_v43  ;;  %v1357_v13 = vrot.slane %v1340_v27, %v3894_v29  ;;  %v3402_v31 = vld [vmem:[%s2785_s26 + $0x50] sm:$0xff] }
  0xfb   : > { %v1321_v57 = vadd.f32 %v1320_v32, %v1319_v51  ;;  %v1361_v11 = vrot.slane %v1340_v27, %v3895_v8  ;;  %v1376_v18 = vmul.f32 %v1288_v58, %v3210_v9  ;;  %v1326_v62 = vrot.slane %v1325_v24, 1 }
  0xfc   : > { %v1332_v55 = vrot.slane %v1331_v10, 1  ;;  %v1334_v19 = vmul.f32 0.125, %v1309_v23  ;;  %v1335_v41 = vmul.f32 0.125, %v1315_v2  ;;  %v1387_v61 = vmul.f32 %v1284_v48, %v3236_v14 }
  0xfd   : > { %v1336_v22 = vmul.f32 0.125, %v1321_v57  ;;  %v1388_v21 = vmul.f32 %v1285_v12, %v3239_v44  ;;  %v1389_v30 = vmul.f32 %v1286_v16, %v3242_v33  ;;  %v1327_v54 = vadd.f32 %v1326_v62, %v1325_v24 }
  0xfe   : > { %v1333_v60 = vadd.f32 %v1332_v55, %v1331_v10  ;;  %v1367_v1 = vadd.f32 %v1345_v28, %v1334_v19  ;;  %v1368_v34 = vadd.f32 %v1349_v52, %v1335_v41  ;;  %v1390_v45 = vmul.f32 %v1287_v50, %v3245_v42 }
  0xff   : > { %v1369_v25 = vadd.f32 %v1353_v0, %v1336_v22  ;;  %v1391_v39 = vmul.f32 %v1288_v58, %v3248_v36  ;;  %v3406_v17 = vmul.f32 %v3402_v31, %v3020_v47  ;;  %v1337_v48 = vmul.f32 0.125, %v1327_v54  ;;  %v2273_v22 = vld [vmem:[%s2778_s11 + $0x40] sm:$0xff]  ;;  %v2277_v54 = vld [vmem:[%s2778_s11 + $0xd8] sm:$0xff] }
 0x100   : > { %v1338_v63 = vmul.f32 0.125, %v1333_v60  ;;  %v1377_v12 = vmul.f32 %v1367_v1, %v3236_v14  ;;  %v1378_v16 = vmul.f32 %v1368_v34, %v3239_v44  ;;  %v1392_v51 = vmul.f32 %v1367_v1, %v3197_v15  ;;  %v2278_v60 = vld [vmem:[%s2778_s11 + $0xe0] sm:$0xff] }
 0x101   : > { %v1379_v43 = vmul.f32 %v1369_v25, %v3242_v33  ;;  %v1393_v50 = vmul.f32 %v1368_v34, %v3200_v26  ;;  %v1394_v58 = vmul.f32 %v1369_v25, %v3203_v4  ;;  %v1370_v27 = vadd.f32 %v1357_v13, %v1337_v48 }
 0x102   : > { %v1371_v3 = vadd.f32 %v1361_v11, %v1338_v63  ;;  %v1382_v59 = vsub.f32 %v3381_v49, %v1377_v12  ;;  %v1383_v53 = vsub.f32 %v3384_v40, %v1378_v16  ;;  %v1397_v32 = vadd.f32 %v1392_v51, %v1387_v61  ;;  %v2270_v49 = vld [vmem:[%s2778_s11 + $0x28] sm:$0xff]  ;;  %v2271_v40 = vld [vmem:[%s2778_s11 + $0x30] sm:$0xff] }
 0x103   : > { %v1384_v56 = vsub.f32 %v1374_v37, %v1379_v43  ;;  %v1398_v28 = vadd.f32 %v1393_v50, %v1388_v21  ;;  %v1399_v52 = vadd.f32 %v1394_v58, %v1389_v30  ;;  %v1380_v0 = vmul.f32 %v1370_v27, %v3245_v42  ;;  %v2272_v37 = vld [vmem:[%s2778_s11 + $0x38] sm:$0xff]  ;;  %v2275_v61 = vld [vmem:[%s2778_s11 + $0xc8] sm:$0xff]  ;;  %v2276_v21 = vld [vmem:[%s2778_s11 + $0xd0] sm:$0xff] }
 0x104   : > { %v1381_v23 = vmul.f32 %v1371_v3, %v3248_v36  ;;  %v1395_v2 = vmul.f32 %v1370_v27, %v3206_v35  ;;  %v1396_v24 = vmul.f32 %v1371_v3, %v3210_v9  ;;  %v1417_v10 = vrot.slane %v1382_v59, %v2795_v5  ;;  %v2274_v30 = vld [vmem:[%s2778_s11 + $0x48] sm:$0xff] }
 0x105   : > { %v1421_v57 = vrot.slane %v1383_v53, %v2795_v5  ;;  %v1425_v13 = vrot.slane %v1384_v56, %v2795_v5  ;;  %v1442_v11 = vrot.slane %v1397_v32, %v2795_v5  ;;  %v1385_v62 = vsub.f32 %v3388_v20, %v1380_v0  ;;  %v2279_v63 = vld [vmem:[%s2778_s11 + $0xe8] sm:$0xff] }
 0x106   : > { %v1386_v55 = vsub.f32 %v1376_v18, %v1381_v23  ;;  %v1400_v19 = vadd.f32 %v1395_v2, %v1390_v45  ;;  %v1401_v41 = vadd.f32 %v1396_v24, %v1391_v39  ;;  %v1434_v1 = vmul.f32 %v2270_v49, %v1417_v10 }
 0x107   : > { %v1435_v34 = vmul.f32 %v2271_v40, %v1421_v57  ;;  %v1436_v25 = vmul.f32 %v2272_v37, %v1425_v13  ;;  %v1446_v48 = vrot.slane %v1398_v28, %v2795_v5  ;;  %v1429_v12 = vrot.slane %v1385_v62, %v2795_v5 }
 0x108   : > { %v1433_v16 = vrot.slane %v1386_v55, %v2795_v5  ;;  %v1450_v20 = vrot.slane %v1399_v52, %v2795_v5  ;;  %v1454_v18 = vrot.slane %v1400_v19, %v2795_v5  ;;  %v1458_v45 = vrot.slane %v1401_v41, %v2795_v5 }
 0x109   : > { %v1459_v39 = vmul.f32 %v2275_v61, %v1442_v11  ;;  %v1460_v43 = vmul.f32 %v2276_v21, %v1446_v48  ;;  %v1469_v51 = vmul.f32 %v2275_v61, %v1417_v10  ;;  %v1437_v50 = vmul.f32 %v2273_v22, %v1429_v12 }
 0x10a   : > { %v1438_v58 = vmul.f32 %v2274_v30, %v1433_v16  ;;  %v1461_v27 = vmul.f32 %v2277_v54, %v1450_v20  ;;  %v1462_v3 = vmul.f32 %v2278_v60, %v1454_v18  ;;  %v1463_v59 = vmul.f32 %v2279_v63, %v1458_v45 }
 0x10b   : > { %v1464_v53 = vadd.f32 %v1459_v39, %v1434_v1  ;;  %v1465_v56 = vadd.f32 %v1460_v43, %v1435_v34  ;;  %v1470_v32 = vmul.f32 %v2276_v21, %v1421_v57  ;;  %v1471_v23 = vmul.f32 %v2277_v54, %v1425_v13  ;;  %v3915_v34 = vld [vmem:[#allocation24_spill] sm:$0xff]  ;;  %v3930_v39 = vld [vmem:[#allocation23_spill] sm:$0xff]  ;;  %v3931_v43 = vld [vmem:[#allocation37_spill] sm:$0xff] }
 0x10c   : > { %v1466_v28 = vadd.f32 %v1461_v27, %v1436_v25  ;;  %v1467_v0 = vadd.f32 %v1462_v3, %v1437_v50  ;;  %v1472_v2 = vmul.f32 %v2278_v60, %v1429_v12  ;;  %v1468_v52 = vadd.f32 %v1463_v59, %v1438_v58  ;;  %v3916_v21 = vld [vmem:[#allocation16_spill] sm:$0xff]  ;;  %v3923_v60 = vld [vmem:[#allocation35_spill] sm:$0xff]  ;;  %v3934_v58 = vld [vmem:[#allocation17_spill] sm:$0xff] }
 0x10d   : > { %v1473_v24 = vmul.f32 %v2279_v63, %v1433_v16  ;;  %v1474_v62 = vmul.f32 %v2270_v49, %v1442_v11  ;;  %v1475_v55 = vmul.f32 %v2271_v40, %v1446_v48  ;;  %v1476_v19 = vmul.f32 %v2272_v37, %v1450_v20  ;;  %v3918_v37 = vld [vmem:[#allocation25_spill] sm:$0xff]  ;;  %v3926_v63 = vld [vmem:[#allocation22_spill] sm:$0xff]  ;;  %v3927_v12 = vld [vmem:[#allocation36_spill] sm:$0xff] }
 0x10e   : > { %v1477_v41 = vmul.f32 %v2273_v22, %v1454_v18  ;;  %v1478_v10 = vmul.f32 %v2274_v30, %v1458_v45  ;;  %v3442_v61 = vadd.f32 %v1464_v53, %v3296_v46  ;;  %v3445_v57 = vadd.f32 %v1465_v56, %v3915_v34  ;;  %v3920_v46 = vld [vmem:[#allocation18_spill] sm:$0xff]  ;;  %v3922_v30 = vld [vmem:[#allocation21_spill] sm:$0xff]  ;;  %v3939_v53 = vld [vmem:[#allocation39_spill] sm:$0xff] }
 0x10f   : > { %v1479_v36 = vsub.f32 %v1469_v51, %v1474_v62  ;;  %v1480_v1 = vsub.f32 %v1470_v32, %v1475_v55  ;;  %v3448_v13 = vadd.f32 %v1466_v28, %v3916_v21  ;;  %v1481_v54 = vsub.f32 %v1471_v23, %v1476_v19  ;;  %v2423_v18 = vld [vmem:[%s2785_s26 + $0x58] sm:$0xff]  ;;  %v2424_v28 = vld [vmem:[%s2785_s26 + $0x60] sm:$0xff]  ;;  %v2426_v62 = vld [vmem:[%s2785_s26 + $0x70] sm:$0xff] }
 0x110   : > { %v1482_v49 = vsub.f32 %v1472_v2, %v1477_v41  ;;  %v1483_v40 = vsub.f32 %v1473_v24, %v1478_v10  ;;  %v3451_v11 = vadd.f32 %v1467_v0, %v3918_v37  ;;  %v3454_v22 = vadd.f32 %v1468_v52, %v3920_v46  ;;  %v3935_v27 = vld [vmem:[#allocation38_spill] sm:$0xff]  ;;  %v2425_v2 = vld [vmem:[%s2785_s26 + $0x68] sm:$0xff]  ;;  %v3943_v52 = vld [vmem:[#allocation27_spill] sm:$0xff] }
 0x111   : > { %3917 = vst [vmem:[#allocation24_spill] sm:$0xff] %v3448_v13  ;;  %v3924_v25 = vsub.f32 %v3922_v30, %v3923_v60  ;;  %v3928_v16 = vsub.f32 %v3926_v63, %v3927_v12  ;;  %v1495_v45 = vmul.f32 %v2423_v18, %v3022_v38  ;;  %v3932_v51 = vsub.f32 %v3930_v39, %v3931_v43  ;;  %v3938_v59 = vld [vmem:[#allocation34_spill] sm:$0xff]  ;;  %v3944_v55 = vld [vmem:[#allocation28_spill] sm:$0xff]  ;;  %v2427_v41 = vld [vmem:[%s2785_s26 + $0xf0] sm:$0xff] }
 0x112   : > { %3919 = vst [vmem:[#allocation16_spill] sm:$0xff] %v3451_v11  ;;  %3921 = vst [vmem:[#allocation25_spill] sm:$0xff] %v3454_v22  ;;  %v3936_v3 = vsub.f32 %v3934_v58, %v3935_v27  ;;  %v3940_v56 = vsub.f32 %v3938_v59, %v3939_v53  ;;  %v3942_v0 = vld [vmem:[#allocation26_spill] sm:$0xff]  ;;  %v1497_v24 = vmul.f32 %v2425_v2, %v3943_v52  ;;  %v3945_v10 = vld [vmem:[#allocation29_spill] sm:$0xff] }
 0x113   : > { %v3459_v48 = vadd.f32 %v1479_v36, %v3924_v25  ;;  %v3464_v20 = vadd.f32 %v1480_v1, %v3928_v16  ;;  %v3471_v50 = vadd.f32 %v1481_v54, %v3932_v51  ;;  %v1496_v23 = vmul.f32 %v2424_v28, %v3942_v0  ;;  %v2428_v34 = vld [vmem:[%s2785_s26 + $0xf8] sm:$0xff]  ;;  %v3947_v37 = vld [vmem:[#allocation31_spill] sm:$0xff]  ;;  %v3948_v30 = vld [vmem:[#allocation32_spill] sm:$0xff] }
 0x114   : > { %v3476_v36 = vadd.f32 %v1482_v49, %v3936_v3  ;;  %v3481_v32 = vadd.f32 %v1483_v40, %v3940_v56  ;;  %v1498_v19 = vmul.f32 %v2426_v62, %v3944_v55  ;;  %v1499_v1 = vmul.f32 %v2427_v41, %v3945_v10  ;;  %v3946_v21 = vld [vmem:[#allocation30_spill] sm:$0xff]  ;;  %v2429_v49 = vld [vmem:[%s2785_s26 + $0x100] sm:$0xff]  ;;  %v2430_v40 = vld [vmem:[%s2785_s26 + $0x108] sm:$0xff] }
 0x115   : > { %3925 = vst [vmem:[#allocation18_spill] sm:$0xff] %v3459_v48  ;;  %3929 = vst [vmem:[#allocation21_spill] sm:$0xff] %v3464_v20  ;;  %v1500_v54 = vmul.f32 %v2428_v34, %v3946_v21  ;;  %v1501_v46 = vmul.f32 %v2429_v49, %v3947_v37  ;;  %v1502_v60 = vmul.f32 %v2430_v40, %v3948_v30  ;;  %v2431_v25 = vld [vmem:[%s2785_s26 + $0x110] sm:$0xff]  ;;  %v3499_v16 = vld [vmem:[#allocation7 + $0xa] sm:$0x1f] }
 0x116   : > { %3933 = vst [vmem:[#allocation35_spill] sm:$0xff] %v3471_v50  ;;  %3937 = vst [vmem:[#allocation22_spill] sm:$0xff] %v3476_v36  ;;  %v3949_v63 = vld [vmem:[#allocation33_spill] sm:$0xff]  ;;  %v3501_v39 = vld [vmem:[#allocation7 + $0x1e] sm:$0x1f]  ;;  %v1504_v51 = vsub.f32 %v3406_v17, %v1499_v1  ;;  %v1577_v27 = vmul.f32 %v3402_v31, %v3945_v10  ;;  %v1578_v3 = vmul.f32 %v2423_v18, %v3946_v21 }
 0x117   : > { %3941 = vst [vmem:[#allocation36_spill] sm:$0xff] %v3481_v32  ;;  %v1503_v12 = vmul.f32 %v2431_v25, %v3949_v63  ;;  %v1544_v43 = vsub.f32 %v3499_v16, %v3501_v39  ;;  %v1505_v58 = vsub.f32 %v1495_v45, %v1500_v54  ;;  %v1506_v59 = vsub.f32 %v1496_v23, %v1501_v46 }
 0x118   : > { %v1507_v53 = vsub.f32 %v1497_v24, %v1502_v60  ;;  %v1509_v36 = vrot.slane %v1504_v51, 4  ;;  %v1579_v20 = vmul.f32 %v2424_v28, %v3947_v37  ;;  %v1580_v48 = vmul.f32 %v2425_v2, %v3948_v30 }
 0x119   : > { %v1508_v56 = vsub.f32 %v1498_v19, %v1503_v12  ;;  %v3509_v32 = vmul.f32 0.0007071068, %v1544_v43  ;;  %v1515_v50 = vrot.slane %v1505_v58, 4  ;;  %v1521_v22 = vrot.slane %v1506_v59, 4 }
 0x11a   : > { %v1527_v11 = vrot.slane %v1507_v53, 4  ;;  %v1510_v31 = vadd.f32 %v1509_v36, %v1504_v51  ;;  %v1581_v36 = vmul.f32 %v2426_v62, %v3949_v63  ;;  %v1582_v51 = vmul.f32 %v2427_v41, %v3020_v47 }
 0x11b   : > { %v1533_v17 = vrot.slane %v1508_v56, 4  ;;  %v1550_v45 = vrot.slane %v3509_v32, %v2795_v5  ;;  %v1516_v1 = vadd.f32 %v1515_v50, %v1505_v58  ;;  %v1554_v18 = vrot.slane %v3509_v32, %v2797_v6 }
 0x11c   : > { %v1558_v23 = vrot.slane %v3509_v32, %v2799_v7  ;;  %v1522_v24 = vadd.f32 %v1521_v22, %v1506_v59  ;;  %v1528_v19 = vadd.f32 %v1527_v11, %v1507_v53  ;;  %v1562_v28 = vrot.slane %v3509_v32, %v3894_v29 }
 0x11d   : > { %v1534_v54 = vadd.f32 %v1533_v17, %v1508_v56  ;;  %v1511_v2 = vrot.slane %v1510_v31, 2  ;;  %v1517_v46 = vrot.slane %v1516_v1, 2  ;;  %v1566_v60 = vrot.slane %v3509_v32, %v3895_v8 }
 0x11e   : > { %v1523_v50 = vrot.slane %v1522_v24, 2  ;;  %v1529_v12 = vrot.slane %v1528_v19, 2  ;;  %v1583_v11 = vmul.f32 %v2428_v34, %v3022_v38  ;;  %v1584_v22 = vmul.f32 %v2429_v49, %v3942_v0 }
 0x11f   : > { %v1535_v43 = vrot.slane %v1534_v54, 2  ;;  %v1512_v58 = vadd.f32 %v1511_v2, %v1510_v31  ;;  %v1518_v30 = vadd.f32 %v1517_v46, %v1516_v1  ;;  %v1585_v17 = vmul.f32 %v2430_v40, %v3943_v52 }
 0x120   : > { %v1524_v59 = vadd.f32 %v1523_v50, %v1522_v24  ;;  %v1530_v53 = vadd.f32 %v1529_v12, %v1528_v19  ;;  %v1586_v62 = vmul.f32 %v2431_v25, %v3944_v55  ;;  %v1587_v63 = vadd.f32 %v1582_v51, %v1577_v27 }
 0x121   : > { %v1536_v56 = vadd.f32 %v1535_v43, %v1534_v54  ;;  %v1513_v37 = vrot.slane %v1512_v58, 1  ;;  %v1519_v32 = vrot.slane %v1518_v30, 1  ;;  %v1588_v41 = vadd.f32 %v1583_v11, %v1578_v3 }
 0x122   : > { %v1525_v21 = vrot.slane %v1524_v59, 1  ;;  %v1531_v10 = vrot.slane %v1530_v53, 1  ;;  %v1589_v2 = vadd.f32 %v1584_v22, %v1579_v20  ;;  %v1590_v34 = vadd.f32 %v1585_v17, %v1580_v48 }
 0x123   : > { %v1537_v13 = vrot.slane %v1536_v56, 1  ;;  %v1514_v31 = vadd.f32 %v1513_v37, %v1512_v58  ;;  %v1520_v1 = vadd.f32 %v1519_v32, %v1518_v30  ;;  %v1591_v19 = vadd.f32 %v1586_v62, %v1581_v36 }
 0x124   : > { %v1526_v46 = vadd.f32 %v1525_v21, %v1524_v59  ;;  %v1532_v49 = vadd.f32 %v1531_v10, %v1530_v53  ;;  %v1592_v40 = vrot.slane %v1587_v63, 4  ;;  %v1598_v12 = vrot.slane %v1588_v41, 4 }
 0x125   : > { %v1538_v24 = vadd.f32 %v1537_v13, %v1536_v56  ;;  %v1539_v54 = vmul.f32 0.125, %v1514_v31  ;;  %v1540_v50 = vmul.f32 0.125, %v1520_v1  ;;  %v1604_v27 = vrot.slane %v1589_v2, 4 }
 0x126   : > { %v1541_v43 = vmul.f32 0.125, %v1526_v46  ;;  %v1542_v52 = vmul.f32 0.125, %v1532_v49  ;;  %v1593_v0 = vadd.f32 %v1592_v40, %v1587_v63  ;;  %v1599_v3 = vadd.f32 %v1598_v12, %v1588_v41 }
 0x127   : > { %v1543_v25 = vmul.f32 0.125, %v1538_v24  ;;  %v1572_v51 = vadd.f32 %v1550_v45, %v1539_v54  ;;  %v1573_v55 = vadd.f32 %v1554_v18, %v1540_v50  ;;  %v1605_v48 = vadd.f32 %v1604_v27, %v1589_v2 }
 0x128   : > { %v1574_v37 = vadd.f32 %v1558_v23, %v1541_v43  ;;  %v1575_v30 = vadd.f32 %v1562_v28, %v1542_v52  ;;  %v1594_v21 = vrot.slane %v1593_v0, 2  ;;  %v1600_v10 = vrot.slane %v1599_v3, 2 }
 0x129   : > { %v1576_v20 = vadd.f32 %v1566_v60, %v1543_v25  ;;  %v1610_v13 = vrot.slane %v1590_v34, 4  ;;  %v1616_v36 = vrot.slane %v1591_v19, 4  ;;  %v1606_v58 = vrot.slane %v1605_v48, 2 }
 0x12a   : > { %v1627_v11 = vadd.f32 %v3501_v39, %v3499_v16  ;;  %v3532_v22 = vmul.f32 %v1572_v51, %v3197_v15  ;;  %v3535_v45 = vmul.f32 %v1573_v55, %v3200_v26  ;;  %v1595_v63 = vadd.f32 %v1594_v21, %v1593_v0 }
 0x12b   : > { %v1601_v18 = vadd.f32 %v1600_v10, %v1599_v3  ;;  %v1611_v23 = vadd.f32 %v1610_v13, %v1590_v34  ;;  %v1617_v52 = vadd.f32 %v1616_v36, %v1591_v19  ;;  %v1607_v28 = vadd.f32 %v1606_v58, %v1605_v48 }
 0x12c   : > { %v1628_v60 = vmul.f32 0.0007071068, %v1627_v11  ;;  %v1662_v59 = vmul.f32 %v1574_v37, %v3203_v4  ;;  %v3539_v53 = vmul.f32 %v1575_v30, %v3206_v35  ;;  %v1596_v56 = vrot.slane %v1595_v63, 1  ;;  %v3950_v11 = vld [vmem:[#allocation20_spill] sm:$0xff] }
 0x12d   : > { %v1602_v17 = vrot.slane %v1601_v18, 1  ;;  %v1612_v16 = vrot.slane %v1611_v23, 2  ;;  %v1618_v39 = vrot.slane %v1617_v52, 2  ;;  %v1608_v32 = vrot.slane %v1607_v28, 1 }
 0x12e   : > { %v1633_v62 = vrot.slane %v1628_v60, %v2795_v5  ;;  %v1637_v41 = vrot.slane %v1628_v60, %v2797_v6  ;;  %v1641_v0 = vrot.slane %v1628_v60, %v2799_v7  ;;  %v1597_v31 = vadd.f32 %v1596_v56, %v1595_v63 }
 0x12f   : > { %v1603_v1 = vadd.f32 %v1602_v17, %v1601_v18  ;;  %v1613_v2 = vadd.f32 %v1612_v16, %v1611_v23  ;;  %v1619_v34 = vadd.f32 %v1618_v39, %v1617_v52  ;;  %v1609_v46 = vadd.f32 %v1608_v32, %v1607_v28  ;;  %v3553_v18 = vld [vmem:[%s2785_s26 + $0x78] sm:$0xff] }
 0x130   : > { %v1645_v49 = vrot.slane %v1628_v60, %v3894_v29  ;;  %v1649_v24 = vrot.slane %v1628_v60, %v3895_v8  ;;  %v1664_v19 = vmul.f32 %v1576_v20, %v3210_v9  ;;  %v1622_v40 = vmul.f32 0.125, %v1597_v31 }
 0x131   : > { %v1614_v54 = vrot.slane %v1613_v2, 1  ;;  %v1620_v50 = vrot.slane %v1619_v34, 1  ;;  %v1623_v12 = vmul.f32 0.125, %v1603_v1  ;;  %v1624_v43 = vmul.f32 0.125, %v1609_v46 }
 0x132   : > { %v1675_v25 = vmul.f32 %v1572_v51, %v3236_v14  ;;  %v1676_v27 = vmul.f32 %v1573_v55, %v3239_v44  ;;  %v1677_v3 = vmul.f32 %v1574_v37, %v3242_v33  ;;  %v1655_v10 = vadd.f32 %v1633_v62, %v1622_v40 }
 0x133   : > { %v1615_v48 = vadd.f32 %v1614_v54, %v1613_v2  ;;  %v1621_v21 = vadd.f32 %v1620_v50, %v1619_v34  ;;  %v1656_v13 = vadd.f32 %v1637_v41, %v1623_v12  ;;  %v1657_v36 = vadd.f32 %v1641_v0, %v1624_v43 }
 0x134   : > { %v1678_v58 = vmul.f32 %v1575_v30, %v3245_v42  ;;  %v1679_v63 = vmul.f32 %v1576_v20, %v3950_v11  ;;  %v3557_v23 = vmul.f32 %v3553_v18, %v3020_v47  ;;  %v1665_v55 = vmul.f32 %v1655_v10, %v3236_v14 }
 0x135   : > { %v1625_v51 = vmul.f32 0.125, %v1615_v48  ;;  %v1626_v52 = vmul.f32 0.125, %v1621_v21  ;;  %v1666_v37 = vmul.f32 %v1656_v13, %v3239_v44  ;;  %v1667_v28 = vmul.f32 %v1657_v36, %v3242_v33  ;;  %v2284_v48 = vld [vmem:[%s2778_s11 + $0x70] sm:$0xff]  ;;  %v2287_v21 = vld [vmem:[%s2778_s11 + $0x100] sm:$0xff] }
 0x136   : > { %v1680_v60 = vmul.f32 %v1655_v10, %v3197_v15  ;;  %v1681_v30 = vmul.f32 %v1656_v13, %v3200_v26  ;;  %v1682_v20 = vmul.f32 %v1657_v36, %v3203_v4  ;;  %v1670_v16 = vsub.f32 %v3532_v22, %v1665_v55  ;;  %v2280_v22 = vld [vmem:[%s2778_s11 + $0x50] sm:$0xff]  ;;  %v2288_v10 = vld [vmem:[%s2778_s11 + $0x108] sm:$0xff] }
 0x137   : > { %v1658_v56 = vadd.f32 %v1645_v49, %v1625_v51  ;;  %v1659_v17 = vadd.f32 %v1649_v24, %v1626_v52  ;;  %v1671_v39 = vsub.f32 %v3535_v45, %v1666_v37  ;;  %v1672_v32 = vsub.f32 %v1662_v59, %v1667_v28  ;;  %v2281_v45 = vld [vmem:[%s2778_s11 + $0x58] sm:$0xff]  ;;  %v2282_v59 = vld [vmem:[%s2778_s11 + $0x60] sm:$0xff]  ;;  %v2289_v55 = vld [vmem:[%s2778_s11 + $0x110] sm:$0xff] }
 0x138   : > { %v1685_v62 = vadd.f32 %v1680_v60, %v1675_v25  ;;  %v1686_v41 = vadd.f32 %v1681_v30, %v1676_v27  ;;  %v1687_v0 = vadd.f32 %v1682_v20, %v1677_v3  ;;  %v1705_v46 = vrot.slane %v1670_v16, %v2795_v5  ;;  %v2283_v25 = vld [vmem:[%s2778_s11 + $0x68] sm:$0xff]  ;;  %v2285_v27 = vld [vmem:[%s2778_s11 + $0xf0] sm:$0xff]  ;;  %v2286_v3 = vld [vmem:[%s2778_s11 + $0xf8] sm:$0xff] }
 0x139   : > { %v1668_v31 = vmul.f32 %v1658_v56, %v3245_v42  ;;  %v1669_v1 = vmul.f32 %v1659_v17, %v3950_v11  ;;  %v1683_v2 = vmul.f32 %v1658_v56, %v3206_v35  ;;  %v1684_v34 = vmul.f32 %v1659_v17, %v3210_v9 }
 0x13a   : > { %v1709_v49 = vrot.slane %v1671_v39, %v2795_v5  ;;  %v1713_v24 = vrot.slane %v1672_v32, %v2795_v5  ;;  %v1730_v54 = vrot.slane %v1685_v62, %v2795_v5  ;;  %v1722_v13 = vmul.f32 %v2280_v22, %v1705_v46 }
 0x13b   : > { %v1673_v50 = vsub.f32 %v3539_v53, %v1668_v31  ;;  %v1674_v40 = vsub.f32 %v1664_v19, %v1669_v1  ;;  %v1688_v12 = vadd.f32 %v1683_v2, %v1678_v58  ;;  %v1689_v43 = vadd.f32 %v1684_v34, %v1679_v63 }
 0x13c   : > { %v1723_v36 = vmul.f32 %v2281_v45, %v1709_v49  ;;  %v1724_v51 = vmul.f32 %v2282_v59, %v1713_v24  ;;  %v1734_v52 = vrot.slane %v1686_v41, %v2795_v5  ;;  %v1738_v53 = vrot.slane %v1687_v0, %v2795_v5 }
 0x13d   : > { %v1717_v37 = vrot.slane %v1673_v50, %v2795_v5  ;;  %v1721_v28 = vrot.slane %v1674_v40, %v2795_v5  ;;  %v1742_v19 = vrot.slane %v1688_v12, %v2795_v5  ;;  %v1746_v58 = vrot.slane %v1689_v43, %v2795_v5 }
 0x13e   : > { %v1747_v63 = vmul.f32 %v2285_v27, %v1730_v54  ;;  %v1748_v60 = vmul.f32 %v2286_v3, %v1734_v52  ;;  %v1757_v30 = vmul.f32 %v2285_v27, %v1705_v46  ;;  %v1749_v17 = vmul.f32 %v2287_v21, %v1738_v53 }
 0x13f   : > { %v1725_v20 = vmul.f32 %v2283_v25, %v1717_v37  ;;  %v1726_v56 = vmul.f32 %v2284_v48, %v1721_v28  ;;  %v1750_v16 = vmul.f32 %v2288_v10, %v1742_v19  ;;  %v1751_v39 = vmul.f32 %v2289_v55, %v1746_v58 }
 0x140   : > { %v1752_v32 = vadd.f32 %v1747_v63, %v1722_v13  ;;  %v1753_v62 = vadd.f32 %v1748_v60, %v1723_v36  ;;  %v1758_v41 = vmul.f32 %v2286_v3, %v1709_v49  ;;  %v1754_v31 = vadd.f32 %v1749_v17, %v1724_v51  ;;  %v3951_v3 = vld [vmem:[#allocation24_spill] sm:$0xff]  ;;  %v2435_v51 = vld [vmem:[%s2785_s26 + $0x80] sm:$0xff]  ;;  %v2437_v60 = vld [vmem:[%s2785_s26 + $0x90] sm:$0xff] }
 0x141   : > { %v1755_v1 = vadd.f32 %v1750_v16, %v1725_v20  ;;  %v1759_v2 = vmul.f32 %v2287_v21, %v1713_v24  ;;  %v1760_v34 = vmul.f32 %v2288_v10, %v1717_v37  ;;  %v1756_v0 = vadd.f32 %v1751_v39, %v1726_v56  ;;  %v3962_v37 = vld [vmem:[#allocation22_spill] sm:$0xff]  ;;  %v3968_v17 = vld [vmem:[#allocation28_spill] sm:$0xff] }
 0x142   : > { %v1761_v50 = vmul.f32 %v2289_v55, %v1721_v28  ;;  %v1762_v40 = vmul.f32 %v2280_v22, %v1730_v54  ;;  %v1763_v12 = vmul.f32 %v2281_v45, %v1734_v52  ;;  %v1764_v43 = vmul.f32 %v2282_v59, %v1738_v53  ;;  %v3952_v59 = vld [vmem:[#allocation16_spill] sm:$0xff]  ;;  %v2438_v56 = vld [vmem:[%s2785_s26 + $0x98] sm:$0xff] }
 0x143   : > { %v1765_v11 = vmul.f32 %v2283_v25, %v1742_v19  ;;  %v1766_v46 = vmul.f32 %v2284_v48, %v1746_v58  ;;  %v3593_v27 = vadd.f32 %v1752_v32, %v3442_v61  ;;  %v3596_v49 = vadd.f32 %v1753_v62, %v3445_v57  ;;  %v3954_v61 = vld [vmem:[#allocation25_spill] sm:$0xff]  ;;  %v3956_v48 = vld [vmem:[#allocation18_spill] sm:$0xff]  ;;  %v3964_v53 = vld [vmem:[#allocation36_spill] sm:$0xff] }
 0x144   : > { %v1767_v42 = vsub.f32 %v1757_v30, %v1762_v40  ;;  %v1768_v13 = vsub.f32 %v1758_v41, %v1763_v12  ;;  %v3599_v24 = vadd.f32 %v1754_v31, %v3951_v3  ;;  %v1769_v21 = vsub.f32 %v1759_v2, %v1764_v43  ;;  %v3958_v57 = vld [vmem:[#allocation21_spill] sm:$0xff]  ;;  %v3966_v58 = vld [vmem:[#allocation26_spill] sm:$0xff]  ;;  %v3967_v30 = vld [vmem:[#allocation27_spill] sm:$0xff] }
 0x145   : > { %v1770_v22 = vsub.f32 %v1760_v34, %v1765_v11  ;;  %v1771_v45 = vsub.f32 %v1761_v50, %v1766_v46  ;;  %v3602_v54 = vadd.f32 %v1755_v1, %v3952_v59  ;;  %v3605_v25 = vadd.f32 %v1756_v0, %v3954_v61  ;;  %v3960_v11 = vld [vmem:[#allocation35_spill] sm:$0xff]  ;;  %v2439_v39 = vld [vmem:[%s2785_s26 + $0x118] sm:$0xff]  ;;  %v3969_v32 = vld [vmem:[#allocation29_spill] sm:$0xff] }
 0x146   : > { %v3608_v10 = vadd.f32 %v1767_v42, %v3956_v48  ;;  %v3611_v36 = vadd.f32 %v1768_v13, %v3958_v57  ;;  %v1783_v52 = vmul.f32 %v2435_v51, %v3022_v38  ;;  %v3616_v55 = vadd.f32 %v1769_v21, %v3960_v11  ;;  %v2436_v42 = vld [vmem:[%s2785_s26 + $0x88] sm:$0xff]  ;;  %v2440_v41 = vld [vmem:[%s2785_s26 + $0x120] sm:$0xff]  ;;  %v3970_v31 = vld [vmem:[#allocation30_spill] sm:$0xff] }
 0x147   : > { %3953 = vst [vmem:[#allocation23_spill] sm:$0xff] %v3602_v54  ;;  %3955 = vst [vmem:[#allocation37_spill] sm:$0xff] %v3605_v25  ;;  %v3619_v28 = vadd.f32 %v1770_v22, %v3962_v37  ;;  %v3622_v19 = vadd.f32 %v1771_v45, %v3964_v53  ;;  %v1784_v63 = vmul.f32 %v2436_v42, %v3966_v58  ;;  %v2441_v2 = vld [vmem:[%s2785_s26 + $0x128] sm:$0xff]  ;;  %v3971_v34 = vld [vmem:[#allocation31_spill] sm:$0xff] }
 0x148   : > { %3957 = vst [vmem:[#allocation17_spill] sm:$0xff] %v3608_v10  ;;  %3959 = vst [vmem:[#allocation38_spill] sm:$0xff] %v3611_v36  ;;  %v1785_v20 = vmul.f32 %v2437_v60, %v3967_v30  ;;  %v1786_v16 = vmul.f32 %v2438_v56, %v3968_v17  ;;  %v1787_v62 = vmul.f32 %v2439_v39, %v3969_v32  ;;  %v2442_v50 = vld [vmem:[%s2785_s26 + $0x130] sm:$0xff]  ;;  %v3972_v40 = vld [vmem:[#allocation32_spill] sm:$0xff] }
 0x149   : > { %3961 = vst [vmem:[#allocation34_spill] sm:$0xff] %v3616_v55  ;;  %3963 = vst [vmem:[#allocation39_spill] sm:$0xff] %v3619_v28  ;;  %v1788_v1 = vmul.f32 %v2440_v41, %v3970_v31  ;;  %v1789_v0 = vmul.f32 %v2441_v2, %v3971_v34  ;;  %v1790_v12 = vmul.f32 %v2442_v50, %v3972_v40  ;;  %v2443_v43 = vld [vmem:[%s2785_s26 + $0x138] sm:$0xff]  ;;  %v3973_v46 = vld [vmem:[#allocation33_spill] sm:$0xff] }
 0x14a   : > { %3965 = vst [vmem:[#allocation24_spill] sm:$0xff] %v3622_v19  ;;  %v1791_v13 = vmul.f32 %v2443_v43, %v3973_v46  ;;  %v3640_v3 = vld [vmem:[#allocation7 + $0xf] sm:$0x1f]  ;;  %v3642_v21 = vld [vmem:[#allocation7 + $0x23] sm:$0x1f]  ;;  %v1792_v45 = vsub.f32 %v3557_v23, %v1787_v62  ;;  %v1865_v61 = vmul.f32 %v3553_v18, %v3969_v32  ;;  %v1866_v48 = vmul.f32 %v2435_v51, %v3970_v31 }
 0x14b   : > { %v1832_v22 = vsub.f32 %v3640_v3, %v3642_v21  ;;  %v1793_v59 = vsub.f32 %v1783_v52, %v1788_v1  ;;  %v1794_v57 = vsub.f32 %v1784_v63, %v1789_v0  ;;  %v1795_v11 = vsub.f32 %v1785_v20, %v1790_v12 }
 0x14c   : > { %v1796_v37 = vsub.f32 %v1786_v16, %v1791_v13  ;;  %v1797_v19 = vrot.slane %v1792_v45, 4  ;;  %v1867_v55 = vmul.f32 %v2436_v42, %v3971_v34  ;;  %v1868_v36 = vmul.f32 %v2437_v60, %v3972_v40 }
 0x14d   : > { %v3650_v53 = vmul.f32 0.0007071068, %v1832_v22  ;;  %v1803_v28 = vrot.slane %v1793_v59, 4  ;;  %v1809_v10 = vrot.slane %v1794_v57, 4  ;;  %v1815_v25 = vrot.slane %v1795_v11, 4 }
 0x14e   : > { %v1821_v23 = vrot.slane %v1796_v37, 4  ;;  %v1798_v18 = vadd.f32 %v1797_v19, %v1792_v45  ;;  %v1869_v19 = vmul.f32 %v2438_v56, %v3973_v46  ;;  %v1870_v40 = vmul.f32 %v2439_v39, %v3020_v47 }
 0x14f   : > { %v1838_v52 = vrot.slane %v3650_v53, %v2795_v5  ;;  %v1804_v32 = vadd.f32 %v1803_v28, %v1793_v59  ;;  %v1842_v51 = vrot.slane %v3650_v53, %v2797_v6  ;;  %v1846_v63 = vrot.slane %v3650_v53, %v2799_v7 }
 0x150   : > { %v1810_v20 = vadd.f32 %v1809_v10, %v1794_v57  ;;  %v1816_v16 = vadd.f32 %v1815_v25, %v1795_v11  ;;  %v1822_v62 = vadd.f32 %v1821_v23, %v1796_v37  ;;  %v1850_v42 = vrot.slane %v3650_v53, %v3894_v29 }
 0x151   : > { %v1799_v60 = vrot.slane %v1798_v18, 2  ;;  %v1805_v31 = vrot.slane %v1804_v32, 2  ;;  %v1854_v1 = vrot.slane %v3650_v53, %v3895_v8  ;;  %v1871_v25 = vmul.f32 %v2440_v41, %v3022_v38 }
 0x152   : > { %v1811_v28 = vrot.slane %v1810_v20, 2  ;;  %v1817_v34 = vrot.slane %v1816_v16, 2  ;;  %v1823_v0 = vrot.slane %v1822_v62, 2  ;;  %v1872_v10 = vmul.f32 %v2441_v2, %v3966_v58 }
 0x153   : > { %v1800_v12 = vadd.f32 %v1799_v60, %v1798_v18  ;;  %v1806_v13 = vadd.f32 %v1805_v31, %v1804_v32  ;;  %v1873_v57 = vmul.f32 %v2442_v50, %v3967_v30  ;;  %v1874_v56 = vmul.f32 %v2443_v43, %v3968_v17 }
 0x154   : > { %v1812_v22 = vadd.f32 %v1811_v28, %v1810_v20  ;;  %v1818_v45 = vadd.f32 %v1817_v34, %v1816_v16  ;;  %v1824_v59 = vadd.f32 %v1823_v0, %v1822_v62  ;;  %v1875_v46 = vadd.f32 %v1870_v40, %v1865_v61 }
 0x155   : > { %v1801_v11 = vrot.slane %v1800_v12, 1  ;;  %v1807_v37 = vrot.slane %v1806_v13, 1  ;;  %v1876_v47 = vadd.f32 %v1871_v25, %v1866_v48  ;;  %v1877_v32 = vadd.f32 %v1872_v10, %v1867_v55 }
 0x156   : > { %v1813_v53 = vrot.slane %v1812_v22, 1  ;;  %v1819_v23 = vrot.slane %v1818_v45, 1  ;;  %v1825_v54 = vrot.slane %v1824_v59, 1  ;;  %v1878_v38 = vadd.f32 %v1873_v57, %v1868_v36 }
 0x157   : > { %v1802_v39 = vadd.f32 %v1801_v11, %v1800_v12  ;;  %v1808_v18 = vadd.f32 %v1807_v37, %v1806_v13  ;;  %v1879_v20 = vadd.f32 %v1874_v56, %v1869_v19  ;;  %v1880_v30 = vrot.slane %v1875_v46, 4 }
 0x158   : > { %v1814_v41 = vadd.f32 %v1813_v53, %v1812_v22  ;;  %v1820_v58 = vadd.f32 %v1819_v23, %v1818_v45  ;;  %v1826_v2 = vadd.f32 %v1825_v54, %v1824_v59  ;;  %v1886_v50 = vrot.slane %v1876_v47, 4 }
 0x159   : > { %v1827_v16 = vmul.f32 0.125, %v1802_v39  ;;  %v1828_v62 = vmul.f32 0.125, %v1808_v18  ;;  %v1892_v43 = vrot.slane %v1877_v32, 4  ;;  %v1881_v28 = vadd.f32 %v1880_v30, %v1875_v46 }
 0x15a   : > { %v1829_v60 = vmul.f32 0.125, %v1814_v41  ;;  %v1830_v31 = vmul.f32 0.125, %v1820_v58  ;;  %v1831_v17 = vmul.f32 0.125, %v1826_v2  ;;  %v1887_v34 = vadd.f32 %v1886_v50, %v1876_v47 }
 0x15b   : > { %v1860_v61 = vadd.f32 %v1838_v52, %v1827_v16  ;;  %v1861_v48 = vadd.f32 %v1842_v51, %v1828_v62  ;;  %v1893_v55 = vadd.f32 %v1892_v43, %v1877_v32  ;;  %v1882_v36 = vrot.slane %v1881_v28, 2 }
 0x15c   : > { %v1862_v0 = vadd.f32 %v1846_v63, %v1829_v60  ;;  %v1863_v40 = vadd.f32 %v1850_v42, %v1830_v31  ;;  %v1888_v12 = vrot.slane %v1887_v34, 2  ;;  %v1898_v13 = vrot.slane %v1878_v38, 4 }
 0x15d   : > { %v1904_v54 = vrot.slane %v1879_v20, 4  ;;  %v1864_v19 = vadd.f32 %v1854_v1, %v1831_v17  ;;  %v1894_v25 = vrot.slane %v1893_v55, 2  ;;  %v1915_v10 = vadd.f32 %v3642_v21, %v3640_v3 }
 0x15e   : > { %v3673_v22 = vmul.f32 %v1860_v61, %v3197_v15  ;;  %v1883_v45 = vadd.f32 %v1882_v36, %v1881_v28  ;;  %v1889_v52 = vadd.f32 %v1888_v12, %v1887_v34  ;;  %v1899_v59 = vadd.f32 %v1898_v13, %v1878_v38  ;;  %v3975_v36 = vld [vmem:[#allocation20_spill] sm:$0xff] }
 0x15f   : > { %v1905_v57 = vadd.f32 %v1904_v54, %v1879_v20  ;;  %v1895_v51 = vadd.f32 %v1894_v25, %v1893_v55  ;;  %v1916_v63 = vmul.f32 0.0007071068, %v1915_v10  ;;  %v1949_v42 = vmul.f32 %v1861_v48, %v3200_v26  ;;  %v3974_v55 = vld [vmem:[#allocation19_spill] sm:$0xff] }
 0x160   : > { %v1950_v11 = vmul.f32 %v1862_v0, %v3203_v4  ;;  %v1884_v37 = vrot.slane %v1883_v45, 1  ;;  %v1890_v56 = vrot.slane %v1889_v52, 1  ;;  %v1900_v1 = vrot.slane %v1899_v59, 2 }
 0x161   : > { %v1906_v46 = vrot.slane %v1905_v57, 2  ;;  %v1896_v53 = vrot.slane %v1895_v51, 1  ;;  %v1921_v3 = vrot.slane %v1916_v63, %v2795_v5  ;;  %v1925_v21 = vrot.slane %v1916_v63, %v2797_v6 }
 0x162   : > { %v3680_v23 = vmul.f32 %v1863_v40, %v3206_v35  ;;  %v1885_v47 = vadd.f32 %v1884_v37, %v1883_v45  ;;  %v1891_v39 = vadd.f32 %v1890_v56, %v1889_v52  ;;  %v1901_v18 = vadd.f32 %v1900_v1, %v1899_v59 }
 0x163   : > { %v1907_v32 = vadd.f32 %v1906_v46, %v1905_v57  ;;  %v1897_v38 = vadd.f32 %v1896_v53, %v1895_v51  ;;  %v1929_v41 = vrot.slane %v1916_v63, %v2799_v7  ;;  %v1933_v58 = vrot.slane %v1916_v63, %v3894_v29 }
 0x164   : > { %v1937_v2 = vrot.slane %v1916_v63, %v3895_v8  ;;  %v1902_v20 = vrot.slane %v1901_v18, 1  ;;  %v1910_v62 = vmul.f32 0.125, %v1885_v47  ;;  %v1911_v30 = vmul.f32 0.125, %v1891_v39  ;;  %v2290_v63 = vld [vmem:[%s2778_s11 + $0x78] sm:$0xff]  ;;  %v2296_v47 = vld [vmem:[%s2778_s11 + $0x120] sm:$0xff] }
 0x165   : > { %v1908_v16 = vrot.slane %v1907_v32, 1  ;;  %v1912_v50 = vmul.f32 0.125, %v1897_v38  ;;  %v1952_v6 = vmul.f32 %v1864_v19, %v3210_v9  ;;  %v1963_v60 = vmul.f32 %v1860_v61, %v3236_v14  ;;  %v2294_v39 = vld [vmem:[%s2778_s11 + $0x98] sm:$0xff] }
 0x166   : > { %v1964_v31 = vmul.f32 %v1861_v48, %v3239_v44  ;;  %v1903_v17 = vadd.f32 %v1902_v20, %v1901_v18  ;;  %v1943_v28 = vadd.f32 %v1921_v3, %v1910_v62  ;;  %v1944_v34 = vadd.f32 %v1925_v21, %v1911_v30  ;;  %v2293_v3 = vld [vmem:[%s2778_s11 + $0x90] sm:$0xff]  ;;  %v2295_v21 = vld [vmem:[%s2778_s11 + $0x118] sm:$0xff]  ;;  %v2297_v18 = vld [vmem:[%s2778_s11 + $0x128] sm:$0xff] }
 0x167   : > { %v1909_v43 = vadd.f32 %v1908_v16, %v1907_v32  ;;  %v1945_v7 = vadd.f32 %v1929_v41, %v1912_v50  ;;  %v1965_v29 = vmul.f32 %v1862_v0, %v3242_v33  ;;  %v1966_v8 = vmul.f32 %v1863_v40, %v3974_v55  ;;  %v2298_v32 = vld [vmem:[%s2778_s11 + $0x130] sm:$0xff]  ;;  %v2299_v20 = vld [vmem:[%s2778_s11 + $0x138] sm:$0xff] }
 0x168   : > { %v1967_v12 = vmul.f32 %v1864_v19, %v3975_v36  ;;  %v1913_v13 = vmul.f32 0.125, %v1903_v17  ;;  %v1953_v25 = vmul.f32 %v1943_v28, %v3236_v14  ;;  %v1954_v10 = vmul.f32 %v1944_v34, %v3239_v44 }
 0x169   : > { %v1914_v54 = vmul.f32 0.125, %v1909_v43  ;;  %v1955_v61 = vmul.f32 %v1945_v7, %v3242_v33  ;;  %v1968_v48 = vmul.f32 %v1943_v28, %v3197_v15  ;;  %v1969_v45 = vmul.f32 %v1944_v34, %v3200_v26 }
 0x16a   : > { %v1970_v0 = vmul.f32 %v1945_v7, %v3203_v4  ;;  %v1946_v40 = vadd.f32 %v1933_v58, %v1913_v13  ;;  %v1958_v19 = vsub.f32 %v3673_v22, %v1953_v25  ;;  %v1959_v59 = vsub.f32 %v1949_v42, %v1954_v10  ;;  %v2291_v22 = vld [vmem:[%s2778_s11 + $0x80] sm:$0xff]  ;;  %v2292_v42 = vld [vmem:[%s2778_s11 + $0x88] sm:$0xff] }
 0x16b   : > { %v1947_v52 = vadd.f32 %v1937_v2, %v1914_v54  ;;  %v1960_v57 = vsub.f32 %v1950_v11, %v1955_v61  ;;  %v1973_v14 = vadd.f32 %v1968_v48, %v1963_v60  ;;  %v1974_v51 = vadd.f32 %v1969_v45, %v1964_v31 }
 0x16c   : > { %v1975_v44 = vadd.f32 %v1970_v0, %v1965_v29  ;;  %v1956_v33 = vmul.f32 %v1946_v40, %v3974_v55  ;;  %v1971_v26 = vmul.f32 %v1946_v40, %v3206_v35  ;;  %v1993_v11 = vrot.slane %v1958_v19, %v2795_v5 }
 0x16d   : > { %v1957_v15 = vmul.f32 %v1947_v52, %v3975_v36  ;;  %v1972_v4 = vmul.f32 %v1947_v52, %v3210_v9  ;;  %v1997_v37 = vrot.slane %v1959_v59, %v2795_v5  ;;  %v2001_v56 = vrot.slane %v1960_v57, %v2795_v5 }
 0x16e   : > { %v2018_v1 = vrot.slane %v1973_v14, %v2795_v5  ;;  %v1961_v35 = vsub.f32 %v3680_v23, %v1956_v33  ;;  %v1976_v53 = vadd.f32 %v1971_v26, %v1966_v8  ;;  %v2010_v38 = vmul.f32 %v2290_v63, %v1993_v11  ;;  %v3976_v33 = vld [vmem:[#allocation23_spill] sm:$0xff]  ;;  %v3977_v26 = vld [vmem:[#allocation37_spill] sm:$0xff] }
 0x16f   : > { %v1962_v46 = vsub.f32 %v1952_v6, %v1957_v15  ;;  %v1977_v9 = vadd.f32 %v1972_v4, %v1967_v12  ;;  %v2011_v41 = vmul.f32 %v2291_v22, %v1997_v37  ;;  %v2012_v58 = vmul.f32 %v2292_v42, %v2001_v56 }
 0x170   : > { %v2022_v2 = vrot.slane %v1974_v51, %v2795_v5  ;;  %v2005_v16 = vrot.slane %v1961_v35, %v2795_v5  ;;  %v2026_v62 = vrot.slane %v1975_v44, %v2795_v5  ;;  %v2030_v30 = vrot.slane %v1976_v53, %v2795_v5 }
 0x171   : > { %v2009_v23 = vrot.slane %v1962_v46, %v2795_v5  ;;  %v2034_v50 = vrot.slane %v1977_v9, %v2795_v5  ;;  %v2035_v6 = vmul.f32 %v2295_v21, %v2018_v1  ;;  %v2045_v31 = vmul.f32 %v2295_v21, %v1993_v11  ;;  %v3981_v11 = vld [vmem:[#allocation39_spill] sm:$0xff] }
 0x172   : > { %v2036_v60 = vmul.f32 %v2296_v47, %v2022_v2  ;;  %v2013_v17 = vmul.f32 %v2293_v3, %v2005_v16  ;;  %v2037_v28 = vmul.f32 %v2297_v18, %v2026_v62  ;;  %v2038_v34 = vmul.f32 %v2298_v32, %v2030_v30 }
 0x173   : > { %v2014_v43 = vmul.f32 %v2294_v39, %v2009_v23  ;;  %v2039_v7 = vmul.f32 %v2299_v20, %v2034_v50  ;;  %v2040_v29 = vadd.f32 %v2035_v6, %v2010_v38  ;;  %v2046_v8 = vmul.f32 %v2296_v47, %v1997_v37 }
 0x174   : > { %v2041_v55 = vadd.f32 %v2036_v60, %v2011_v41  ;;  %v2042_v36 = vadd.f32 %v2037_v28, %v2012_v58  ;;  %v2043_v12 = vadd.f32 %v2038_v34, %v2013_v17  ;;  %v2047_v13 = vmul.f32 %v2297_v18, %v2001_v56  ;;  %v3982_v56 = vld [vmem:[#allocation24_spill] sm:$0xff] }
 0x175   : > { %v2048_v54 = vmul.f32 %v2298_v32, %v2005_v16  ;;  %v2044_v25 = vadd.f32 %v2039_v7, %v2014_v43  ;;  %v2049_v10 = vmul.f32 %v2299_v20, %v2009_v23  ;;  %v2050_v5 = vmul.f32 %v2290_v63, %v2018_v1  ;;  %v3978_v63 = vld [vmem:[#allocation17_spill] sm:$0xff] }
 0x176   : > { %v2051_v61 = vmul.f32 %v2291_v22, %v2022_v2  ;;  %v2052_v48 = vmul.f32 %v2292_v42, %v2026_v62  ;;  %v2053_v45 = vmul.f32 %v2293_v3, %v2030_v30  ;;  %v2054_v0 = vmul.f32 %v2294_v39, %v2034_v50 }
 0x177   : > { %v2060_v40 = vadd.f32 %v2040_v29, %v3593_v27  ;;  %v2055_v52 = vsub.f32 %v2045_v31, %v2050_v5  ;;  %v2061_v59 = vadd.f32 %v2041_v55, %v3596_v49  ;;  %v2062_v57 = vadd.f32 %v2042_v36, %v3599_v24  ;;  %v3979_v27 = vld [vmem:[#allocation38_spill] sm:$0xff] }
 0x178   : > { %v2056_v19 = vsub.f32 %v2046_v8, %v2051_v61  ;;  %v2057_v14 = vsub.f32 %v2047_v13, %v2052_v48  ;;  %v2058_v51 = vsub.f32 %v2048_v54, %v2053_v45  ;;  %v2059_v44 = vsub.f32 %v2049_v10, %v2054_v0  ;;  %v3980_v49 = vld [vmem:[#allocation34_spill] sm:$0xff] }
 0x179   : > { %v2063_v15 = vadd.f32 %v2043_v12, %v3976_v33  ;;  %2070 = vst [vmem:[%s272_s10] sm:$0xff] %v2060_v40  ;;  %v2064_v4 = vadd.f32 %v2044_v25, %v3977_v26  ;;  %v2065_v22 = vadd.f32 %v2055_v52, %v3978_v63  ;;  %2071 = vst [vmem:[%s272_s10 + $0x8] sm:$0xff] %v2061_v59 }
 0x17a   : > { %v2066_v42 = vadd.f32 %v2056_v19, %v3979_v27  ;;  %2072 = vst [vmem:[%s272_s10 + $0x10] sm:$0xff] %v2062_v57  ;;  %v2067_v24 = vadd.f32 %v2057_v14, %v3980_v49  ;;  %v2068_v37 = vadd.f32 %v2058_v51, %v3981_v11  ;;  %v2069_v1 = vadd.f32 %v2059_v44, %v3982_v56 }
 0x17b   : > { %2073 = vst [vmem:[%s272_s10 + $0x18] sm:$0xff] %v2063_v15  ;;  %2074 = vst [vmem:[%s272_s10 + $0x20] sm:$0xff] %v2064_v4 }
 0x17c   : > { %2300 = vst [vmem:[%s272_s10 + $0x28] sm:$0xff] %v2065_v22  ;;  %2301 = vst [vmem:[%s272_s10 + $0x30] sm:$0xff] %v2066_v42 }
 0x17d   : > { %2302 = vst [vmem:[%s272_s10 + $0x38] sm:$0xff] %v2067_v24  ;;  %2303 = vst [vmem:[%s272_s10 + $0x40] sm:$0xff] %v2068_v37 }
 0x17e   : > { %2304 = vst [vmem:[%s272_s10 + $0x48] sm:$0xff] %v2069_v1 }
 0x17f   : > { %2541 = shalt.err (!%p2538_p6)
}
 0x180   : > { %s2542_s5 = scalar_lea.hbm %s3737_s28, 1280  ;;  %s2546_s19 = scalar_lea.hbm %s3793_s3, 2560 }
 0x181   : > { %p2543_p9 = scmp.ne.s32.totalorder %s3737_s28, %s2542_s5  ;;  %p2547_p3 = scmp.lt.s32.totalorder %s3737_s28, %s3793_s3 }
 0x182   : > { %p2548_p5 = scmp.lt.s32.totalorder %s2546_s19, %s2542_s5 }
 0x183   : > { %p2544_p12 = pnand %p2543_p9, %p2728_p0 }
 0x184   : > { %p2549_p1 = por %p2548_p5, %p2547_p3 }
 0x185   : > { %p2545_p13 = pneg %p2544_p12 }
 0x187   : > { %p2550_p4 = pnand %p2549_p1, %p2545_p13 }
 0x189   : > { %2553 = shalt.err (!%p2550_p4)
}
 0x18a   : > { %s2627_s11 = smov 640   ;;  %s2628_s14 = smov 40  }
 0x18b   : > { %2323 = dma.vmem_to_hbm [thread:$0]  (%p2728_p0), %s3739_s23, 1280, %s3737_s28, %s2082_s29, %s2627_s11, %s2627_s11, %s2628_s14  }
 0x18c PF: > { %s2112_s22 = sand.u32 1, %s2596_s12   ;;  %p3983_p8 = scmp.ne.s32.totalorder %s3859_s21, 0 }
 0x18d   : > { %s2113_s26 = scalar_lea.sflag [#allocation4], %s2112_s22 }
 0x18e   : > { %p2337_p11 = pnand %p2225_p10, %p3983_p8 }
 0x190   : > { %p2338_p7 = pneg %p2337_p11 }
 0x192   : > { %2591 = dma.done.wait (%p2338_p7), %s2113_s26, 1280  }
 0x193   : > { %2593 = vsyncadd (%p2338_p7), %s2113_s26, 4294966016  ;;  %s22_s17 = sadd.s32 1, %s2616_s17   ;;  %s3984_s18 = sld [smem:[#allocation13_spill]] }
 0x194   : > { %p19_p2 = scmp.ge.s32.totalorder %s22_s17, 4   ;;  %s3985_s14 = sld [smem:[#allocation15_spill]] }
 0x195   : > { %s3986_s6 = sld [smem:[#allocation14_spill]]  ;;  %s3987_s12 = smov %s2600_s13 }
 0x196   : > { %s3989_s15 = smov %s2612_s16 }
 0x197   :  { %21 = sbr.rel (!%p19_p2) target bundleno = 11 (0xb), region = 117 }
 0x199   : > { %s3988_s13 = smov %s3984_s18 }
 0x19b   : > { %s3990_s16 = smov %s3986_s6 }
 0x19c   :  { %2118 = vsyncpa [#allocation3], 1 }
 0x19d   :  { %2120 = vsyncpa [#allocation3 + $0x1], 1 }
 0x19e   :  { %2121 = vsyncpa [#allocation6], 1 }
 0x19f   :  { %2123 = vsyncpa [#allocation6 + $0x1], 1 }
 0x1a0   :  { %2124 = vsyncpa [#allocation4], 1 }
 0x1a1   :  { %2126 = vsyncpa [#allocation4 + $0x1], 1 }

</bundles_post_ra>
